<compile_context>
chip_gen: v7x
topology: tpu7x:2x2x1
jax: 0.10.0
libtpu: 0.0.40
codegen_flags: <defaults>
</compile_context>

<pallas_src>
import numpy as np
import jax
import jax.numpy as jnp
from jax.experimental import pallas as pl
from jax.experimental.pallas import tpu as pltpu

# ----- small, self-consistent hyper-params (module defaults scaled down) -----
N = 8          # number of levers (module's `n`)
PULLS = 4      # number of pulls -> PULLS-1 sub-modules
WIDTH = 32     # module_width
BATCH = 8      # number of reward generators (batch)

LANES = 128                                   # lane-dense padded width
RRELU_SLOPE = (1.0 / 8.0 + 1.0 / 3.0) / 2.0   # nn.RReLU eval-mode negative slope
NEG_PAD = -1.0e30                             # lin4 pad-lane bias -> softmax pad == 0


# ------------------------------ Pallas kernel --------------------------------
def _mab_kernel(io_ref, w_ref, b_ref, out_ref):
    """Whole pull loop in one invocation.  io_ref[0] = initial history
    [rand_input | reward0 | 0...], io_ref[1] = env probability table (padded).
    w_ref[p, l] / b_ref[p, l] are the (zero-padded) weights of pull p, layer l."""
    hist = io_ref[0]                                   # (B, 128) lane-dense history
    env = io_ref[1]                                    # (B, 128) env prob table
    B = hist.shape[0]
    lane = jax.lax.broadcasted_iota(jnp.int32, (B, LANES), 1)

    for p in range(PULLS - 1):                         # statically unrolled pulls
        # ---- 4x (Linear + RReLU): uniform (B,128)x(128,128) matmuls ----------
        h = hist
        for layer in range(4):
            h = jnp.dot(h, w_ref[p, layer],
                        preferred_element_type=jnp.float32) + b_ref[p, layer]
            h = jnp.where(h >= 0.0, h, RRELU_SLOPE * h)

        # ---- softmax over the lever lanes ------------------------------------
        # pad lanes carry a huge negative bias from lin4 -> exp underflows to
        # exactly 0 there, so a full-lane max/sum is correct and the store is
        # an unmasked lane-dense (B,128) block.
        m = jnp.max(h, axis=-1, keepdims=True)
        e = jnp.exp(h - m)
        out_sm = e / jnp.sum(e, axis=-1, keepdims=True)
        out_ref[p] = out_sm

        # ---- on-device lever pull + reward lookup ----------------------------
        # argmax on pre-softmax logits (softmax is monotone -> same argmax).
        # TODO(synk): torch breaks argmax ties via np.random.choice; ties are
        # measure-zero for random floats, so lowest-index argmax is used here.
        lever = jnp.min(jnp.where(h == m, lane, LANES), axis=-1, keepdims=True)
        reward = jnp.sum(jnp.where(lane == lever, env, 0.0),
                         axis=-1, keepdims=True)        # (B, 1)

        # ---- append [softmax | reward] as the next history segment -----------
        if p + 1 < PULLS - 1:                           # final pull: never read
            off = (p + 1) * (N + 1)
            row = jax.lax.broadcasted_iota(jnp.int32, (LANES, LANES), 0)
            col = jax.lax.broadcasted_iota(jnp.int32, (LANES, LANES), 1)
            place = ((col == row + off) & (row < N)).astype(jnp.float32)
            hist = (hist
                    + jnp.dot(out_sm, place, preferred_element_type=jnp.float32)
                    + reward * (lane == off + N).astype(jnp.float32))


def mab_forward_pallas(io_pad, w_slab, b_slab):
    """All PULLS-1 per-pull sub-modules in a single pallas_call (grid=(1,))."""
    return pl.pallas_call(
        _mab_kernel,
        out_shape=jax.ShapeDtypeStruct((PULLS - 1, BATCH, LANES), jnp.float32),
        grid=(1,),
        in_specs=[
            pl.BlockSpec(io_pad.shape, lambda i: (0, 0, 0)),        # x0 | env
            pl.BlockSpec(w_slab.shape, lambda i: (0, 0, 0, 0)),     # weights
            pl.BlockSpec(b_slab.shape, lambda i: (0, 0, 0, 0)),     # biases
        ],
        out_specs=pl.BlockSpec((PULLS - 1, BATCH, LANES), lambda i: (0, 0, 0)),
        compiler_params=pltpu.CompilerParams(dimension_semantics=("arbitrary",)),
    )(io_pad, w_slab, b_slab)


# --------------------------- parameters (deterministic) ----------------------
def init_params(key):
    """Per-pull parameters packed into uniform zero-padded 128x128 blocks.
    Layer 0 (lin1) uses only the first (p+1)*(N+1) input rows; layer 3 (lin4)
    uses only the first N output columns, with NEG_PAD bias on the pad lanes."""
    w_slab = np.zeros((PULLS - 1, 4, LANES, LANES), np.float32)
    b_slab = np.zeros((PULLS - 1, 4, 1, LANES), np.float32)
    b_slab[:, 3, :, :] = NEG_PAD   # lin4 pad lanes -> exact zeros after softmax

    for p in range(PULLS - 1):
        in1 = (p + 1) * (N + 1)
        key, k1, k2, k3, k4 = jax.random.split(key, 5)

        def lin(k, fan_in, fan_out):
            bound = 1.0 / np.sqrt(fan_in)
            kw, kb = jax.random.split(k)
            w = jax.random.uniform(kw, (fan_in, fan_out), jnp.float32, -bound, bound)
            b = jax.random.uniform(kb, (fan_out,), jnp.float32, -bound, bound)
            return np.asarray(w), np.asarray(b)

        w1, b1 = lin(k1, in1, WIDTH)
        w2, b2 = lin(k2, WIDTH, WIDTH)
        w3, b3 = lin(k3, WIDTH, WIDTH)
        w4, b4 = lin(k4, WIDTH, N)

        w_slab[p, 0, :in1, :WIDTH] = w1
        w_slab[p, 1, :WIDTH, :WIDTH] = w2
        w_slab[p, 2, :WIDTH, :WIDTH] = w3
        w_slab[p, 3, :WIDTH, :N] = w4
        b_slab[p, 0, 0, :WIDTH] = b1
        b_slab[p, 1, 0, :WIDTH] = b2
        b_slab[p, 2, 0, :WIDTH] = b3
        b_slab[p, 3, 0, :N] = b4

    return jnp.asarray(w_slab), jnp.asarray(b_slab)


# ------------------------------- forward pass --------------------------------
# TODO(synk): the external RewardGenerator (arbitrary Python callable) is
# replaced by an on-device probability-table lookup: reward = env_probs[b, lever].
@jax.jit
def forward(w_slab, b_slab, env_probs, key):
    B = env_probs.shape[0]
    # torch.rand((B, n)) equivalent -- random first lever pull (done in JAX)
    rand_input = jax.random.uniform(key, (B, N), dtype=jnp.float32)
    lever0 = jnp.argmax(rand_input, axis=-1)                               # (B,)
    reward0 = jnp.take_along_axis(env_probs, lever0[:, None], axis=1)      # (B,1)

    # pack [x0 | env] into one lane-dense (2, B, 128) slab for the kernel
    io_pad = jnp.zeros((2, B, LANES), jnp.float32)
    io_pad = io_pad.at[0, :, :N].set(rand_input)
    io_pad = io_pad.at[0, :, N:N + 1].set(reward0)
    io_pad = io_pad.at[1, :, :N].set(env_probs)

    out_slab = mab_forward_pallas(io_pad, w_slab, b_slab)                  # (P-1,B,128)
    outs = out_slab[:, :, :N]                                              # (P-1,B,N)

    # levers / rewards for pulls 1..PULLS-1 (same math the kernel used internally)
    levers_rest = jnp.argmax(outs, axis=-1)                                # (P-1,B)
    rewards_rest = jnp.take_along_axis(
        jnp.broadcast_to(env_probs[None], (PULLS - 1, B, N)),
        levers_rest[:, :, None], axis=2)[..., 0]                           # (P-1,B)

    levers = jnp.concatenate([lever0[None, :], levers_rest], axis=0).T     # (B,PULLS)
    rewards = jnp.concatenate([reward0.T, rewards_rest], axis=0).T         # (B,PULLS)

    # torch returns (B, 1, (pulls-1)*n), concatenated along dim 2 in pull order
    module_outputs = jnp.transpose(outs, (1, 0, 2)).reshape(B, 1, (PULLS - 1) * N)
    return module_outputs, levers, rewards


# ------------------------------------ main ------------------------------------
if __name__ == "__main__":
    key = jax.random.PRNGKey(0)
    key_params, key_input, key_env = jax.random.split(key, 3)

    w_slab, b_slab = init_params(key_params)
    env_probs = jax.random.uniform(key_env, (BATCH, N), dtype=jnp.float32)

    module_outputs, levers, rewards = jax.block_until_ready(
        forward(w_slab, b_slab, env_probs, key_input))

    module_outputs = np.asarray(module_outputs)
    levers = np.asarray(levers)
    rewards = np.asarray(rewards)

    assert module_outputs.shape == (BATCH, 1, (PULLS - 1) * N)
    assert levers.shape == (BATCH, PULLS)
    assert rewards.shape == (BATCH, PULLS)
    # each per-pull block of the output is a softmax -> sums to ~1 (exact divide)
    sums = module_outputs.reshape(BATCH, PULLS - 1, N).sum(-1)
    assert np.allclose(sums, 1.0, atol=1e-5)
    # every reward must equal the env probability of the pulled lever
    env_np = np.asarray(env_probs)
    for b in range(BATCH):
        for t in range(PULLS):
            assert abs(rewards[b, t] - env_np[b, levers[b, t]]) < 1e-6

    print("KERNEL_OK")
</pallas_src>

<mosaic_0001>
module attributes {stable_mosaic.version = 11 : i64} {
  func.func @_mab_kernel(%arg0: i32, %arg1: memref<2x8x128xf32, #tpu.memory_space<vmem>>, %arg2: memref<3x4x128x128xf32, #tpu.memory_space<vmem>>, %arg3: memref<3x4x1x128xf32, #tpu.memory_space<vmem>>, %arg4: memref<3x8x128xf32, #tpu.memory_space<vmem>>) attributes {dimension_semantics = [#tpu.dimension_semantics<arbitrary>], iteration_bounds = array<i64: 1>, scalar_prefetch = 0 : i64, scratch_operands = 0 : i64, tpu.core_type = #tpu.core_type<tc>, window_params = [{pipeline_mode = #tpu.pipeline_mode<synchronous>, transform_indices = @transform_0, window_bounds = array<i64: 2, 8, 128>}, {pipeline_mode = #tpu.pipeline_mode<synchronous>, transform_indices = @transform_1, window_bounds = array<i64: 3, 4, 128, 128>}, {pipeline_mode = #tpu.pipeline_mode<synchronous>, transform_indices = @transform_2, window_bounds = array<i64: 3, 4, 1, 128>}, {pipeline_mode = #tpu.pipeline_mode<synchronous>, transform_indices = @transform_3, window_bounds = array<i64: 3, 8, 128>}]} {
    %c0 = arith.constant 0 : index
    %c0_0 = arith.constant 0 : index
    %c0_1 = arith.constant 0 : index
    %0 = vector.load %arg1[%c0, %c0_0, %c0_1] : memref<2x8x128xf32, #tpu.memory_space<vmem>>, vector<1x8x128xf32>
    %1 = vector.shape_cast %0 : vector<1x8x128xf32> to vector<8x128xf32>
    %c1 = arith.constant 1 : index
    %c0_2 = arith.constant 0 : index
    %c0_3 = arith.constant 0 : index
    %2 = vector.load %arg1[%c1, %c0_2, %c0_3] : memref<2x8x128xf32, #tpu.memory_space<vmem>>, vector<1x8x128xf32>
    %3 = vector.shape_cast %2 : vector<1x8x128xf32> to vector<8x128xf32>
    %4 = tpu.iota {dimensions = array<i32: 1>} : vector<8x128xi32>
    %c0_4 = arith.constant 0 : index
    %c0_5 = arith.constant 0 : index
    %c0_6 = arith.constant 0 : index
    %c0_7 = arith.constant 0 : index
    %5 = vector.load %arg2[%c0_4, %c0_5, %c0_6, %c0_7] : memref<3x4x128x128xf32, #tpu.memory_space<vmem>>, vector<1x1x128x128xf32>
    %6 = vector.shape_cast %5 : vector<1x1x128x128xf32> to vector<128x128xf32>
    %cst = arith.constant dense<0.000000e+00> : vector<8x128xf32>
    %7 = tpu.matmul %1, %6, %cst {dimension_numbers = #tpu.dot_dimension_numbers<[1], [0], [0], [1], [0, 0, 1, 1], [], []>} : vector<8x128xf32>, vector<128x128xf32>, vector<8x128xf32> -> vector<8x128xf32>
    %c0_8 = arith.constant 0 : index
    %c0_9 = arith.constant 0 : index
    %c0_10 = arith.constant 0 : index
    %c0_11 = arith.constant 0 : index
    %8 = vector.load %arg3[%c0_8, %c0_9, %c0_10, %c0_11] : memref<3x4x1x128xf32, #tpu.memory_space<vmem>>, vector<1x1x1x128xf32>
    %9 = vector.shape_cast %8 : vector<1x1x1x128xf32> to vector<1x128xf32>
    %10 = vector.broadcast %9 : vector<1x128xf32> to vector<8x128xf32>
    %11 = arith.addf %7, %10 : vector<8x128xf32>
    %cst_12 = arith.constant 0.000000e+00 : f32
    %12 = vector.broadcast %cst_12 : f32 to vector<8x128xf32>
    %13 = arith.cmpf oge, %11, %12 : vector<8x128xf32>
    %cst_13 = arith.constant 0.229166672 : f32
    %14 = vector.broadcast %cst_13 : f32 to vector<8x128xf32>
    %15 = arith.mulf %14, %11 : vector<8x128xf32>
    %16 = arith.select %13, %11, %15 : vector<8x128xi1>, vector<8x128xf32>
    %c0_14 = arith.constant 0 : index
    %c1_15 = arith.constant 1 : index
    %c0_16 = arith.constant 0 : index
    %c0_17 = arith.constant 0 : index
    %17 = vector.load %arg2[%c0_14, %c1_15, %c0_16, %c0_17] : memref<3x4x128x128xf32, #tpu.memory_space<vmem>>, vector<1x1x128x128xf32>
    %18 = vector.shape_cast %17 : vector<1x1x128x128xf32> to vector<128x128xf32>
    %cst_18 = arith.constant dense<0.000000e+00> : vector<8x128xf32>
    %19 = tpu.matmul %16, %18, %cst_18 {dimension_numbers = #tpu.dot_dimension_numbers<[1], [0], [0], [1], [0, 0, 1, 1], [], []>} : vector<8x128xf32>, vector<128x128xf32>, vector<8x128xf32> -> vector<8x128xf32>
    %c0_19 = arith.constant 0 : index
    %c1_20 = arith.constant 1 : index
    %c0_21 = arith.constant 0 : index
    %c0_22 = arith.constant 0 : index
    %20 = vector.load %arg3[%c0_19, %c1_20, %c0_21, %c0_22] : memref<3x4x1x128xf32, #tpu.memory_space<vmem>>, vector<1x1x1x128xf32>
    %21 = vector.shape_cast %20 : vector<1x1x1x128xf32> to vector<1x128xf32>
    %22 = vector.broadcast %21 : vector<1x128xf32> to vector<8x128xf32>
    %23 = arith.addf %19, %22 : vector<8x128xf32>
    %cst_23 = arith.constant 0.000000e+00 : f32
    %24 = vector.broadcast %cst_23 : f32 to vector<8x128xf32>
    %25 = arith.cmpf oge, %23, %24 : vector<8x128xf32>
    %cst_24 = arith.constant 0.229166672 : f32
    %26 = vector.broadcast %cst_24 : f32 to vector<8x128xf32>
    %27 = arith.mulf %26, %23 : vector<8x128xf32>
    %28 = arith.select %25, %23, %27 : vector<8x128xi1>, vector<8x128xf32>
    %c0_25 = arith.constant 0 : index
    %c2 = arith.constant 2 : index
    %c0_26 = arith.constant 0 : index
    %c0_27 = arith.constant 0 : index
    %29 = vector.load %arg2[%c0_25, %c2, %c0_26, %c0_27] : memref<3x4x128x128xf32, #tpu.memory_space<vmem>>, vector<1x1x128x128xf32>
    %30 = vector.shape_cast %29 : vector<1x1x128x128xf32> to vector<128x128xf32>
    %cst_28 = arith.constant dense<0.000000e+00> : vector<8x128xf32>
    %31 = tpu.matmul %28, %30, %cst_28 {dimension_numbers = #tpu.dot_dimension_numbers<[1], [0], [0], [1], [0, 0, 1, 1], [], []>} : vector<8x128xf32>, vector<128x128xf32>, vector<8x128xf32> -> vector<8x128xf32>
    %c0_29 = arith.constant 0 : index
    %c2_30 = arith.constant 2 : index
    %c0_31 = arith.constant 0 : index
    %c0_32 = arith.constant 0 : index
    %32 = vector.load %arg3[%c0_29, %c2_30, %c0_31, %c0_32] : memref<3x4x1x128xf32, #tpu.memory_space<vmem>>, vector<1x1x1x128xf32>
    %33 = vector.shape_cast %32 : vector<1x1x1x128xf32> to vector<1x128xf32>
    %34 = vector.broadcast %33 : vector<1x128xf32> to vector<8x128xf32>
    %35 = arith.addf %31, %34 : vector<8x128xf32>
    %cst_33 = arith.constant 0.000000e+00 : f32
    %36 = vector.broadcast %cst_33 : f32 to vector<8x128xf32>
    %37 = arith.cmpf oge, %35, %36 : vector<8x128xf32>
    %cst_34 = arith.constant 0.229166672 : f32
    %38 = vector.broadcast %cst_34 : f32 to vector<8x128xf32>
    %39 = arith.mulf %38, %35 : vector<8x128xf32>
    %40 = arith.select %37, %35, %39 : vector<8x128xi1>, vector<8x128xf32>
    %c0_35 = arith.constant 0 : index
    %c3 = arith.constant 3 : index
    %c0_36 = arith.constant 0 : index
    %c0_37 = arith.constant 0 : index
    %41 = vector.load %arg2[%c0_35, %c3, %c0_36, %c0_37] : memref<3x4x128x128xf32, #tpu.memory_space<vmem>>, vector<1x1x128x128xf32>
    %42 = vector.shape_cast %41 : vector<1x1x128x128xf32> to vector<128x128xf32>
    %cst_38 = arith.constant dense<0.000000e+00> : vector<8x128xf32>
    %43 = tpu.matmul %40, %42, %cst_38 {dimension_numbers = #tpu.dot_dimension_numbers<[1], [0], [0], [1], [0, 0, 1, 1], [], []>} : vector<8x128xf32>, vector<128x128xf32>, vector<8x128xf32> -> vector<8x128xf32>
    %c0_39 = arith.constant 0 : index
    %c3_40 = arith.constant 3 : index
    %c0_41 = arith.constant 0 : index
    %c0_42 = arith.constant 0 : index
    %44 = vector.load %arg3[%c0_39, %c3_40, %c0_41, %c0_42] : memref<3x4x1x128xf32, #tpu.memory_space<vmem>>, vector<1x1x1x128xf32>
    %45 = vector.shape_cast %44 : vector<1x1x1x128xf32> to vector<1x128xf32>
    %46 = vector.broadcast %45 : vector<1x128xf32> to vector<8x128xf32>
    %47 = arith.addf %43, %46 : vector<8x128xf32>
    %cst_43 = arith.constant 0.000000e+00 : f32
    %48 = vector.broadcast %cst_43 : f32 to vector<8x128xf32>
    %49 = arith.cmpf oge, %47, %48 : vector<8x128xf32>
    %cst_44 = arith.constant 0.229166672 : f32
    %50 = vector.broadcast %cst_44 : f32 to vector<8x128xf32>
    %51 = arith.mulf %50, %47 : vector<8x128xf32>
    %52 = arith.select %49, %47, %51 : vector<8x128xi1>, vector<8x128xf32>
    %cst_45 = arith.constant dense<0xFF800000> : vector<8xf32>
    %53 = vector.multi_reduction <maximumf>, %52, %cst_45 [1] : vector<8x128xf32> to vector<8xf32>
    %54 = vector.shape_cast %53 : vector<8xf32> to vector<8x1xf32>
    %55 = vector.broadcast %54 : vector<8x1xf32> to vector<8x128xf32>
    %56 = arith.subf %52, %55 : vector<8x128xf32>
    %57 = math.exp %56 : vector<8x128xf32>
    %cst_46 = arith.constant dense<0.000000e+00> : vector<8xf32>
    %58 = vector.multi_reduction <add>, %57, %cst_46 [1] : vector<8x128xf32> to vector<8xf32>
    %59 = vector.shape_cast %58 : vector<8xf32> to vector<8x1xf32>
    %60 = vector.broadcast %59 : vector<8x1xf32> to vector<8x128xf32>
    %61 = arith.divf %57, %60 : vector<8x128xf32>
    %c0_47 = arith.constant 0 : index
    %c0_48 = arith.constant 0 : index
    %c0_49 = arith.constant 0 : index
    %62 = vector.load %arg4[%c0_47, %c0_48, %c0_49] : memref<3x8x128xf32, #tpu.memory_space<vmem>>, vector<1x8x128xf32>
    %63 = vector.shape_cast %62 : vector<1x8x128xf32> to vector<8x128xf32>
    %64 = vector.shape_cast %61 : vector<8x128xf32> to vector<1x8x128xf32>
    tpu.vector_store %arg4[%c0_47, %c0_48, %c0_49], %64 {strides = array<i32>} : memref<3x8x128xf32, #tpu.memory_space<vmem>>, vector<1x8x128xf32>,
    %65 = vector.broadcast %54 : vector<8x1xf32> to vector<8x128xf32>
    %66 = arith.cmpf oeq, %52, %65 : vector<8x128xf32>
    %c128_i32 = arith.constant 128 : i32
    %67 = vector.broadcast %c128_i32 : i32 to vector<8x128xi32>
    %68 = arith.select %66, %4, %67 : vector<8x128xi1>, vector<8x128xi32>
    %cst_50 = arith.constant dense<2147483647> : vector<8xi32>
    %69 = vector.multi_reduction <minsi>, %68, %cst_50 [1] : vector<8x128xi32> to vector<8xi32>
    %70 = vector.shape_cast %69 : vector<8xi32> to vector<8x1xi32>
    %71 = vector.broadcast %70 : vector<8x1xi32> to vector<8x128xi32>
    %72 = arith.cmpi eq, %4, %71 : vector<8x128xi32>
    %cst_51 = arith.constant 0.000000e+00 : f32
    %73 = vector.broadcast %cst_51 : f32 to vector<8x128xf32>
    %74 = arith.select %72, %3, %73 : vector<8x128xi1>, vector<8x128xf32>
    %cst_52 = arith.constant dense<0.000000e+00> : vector<8xf32>
    %75 = vector.multi_reduction <add>, %74, %cst_52 [1] : vector<8x128xf32> to vector<8xf32>
    %76 = vector.shape_cast %75 : vector<8xf32> to vector<8x1xf32>
    %77 = tpu.iota {dimensions = array<i32: 0>} : vector<128x128xi32>
    %78 = tpu.iota {dimensions = array<i32: 1>} : vector<128x128xi32>
    %c9_i32 = arith.constant 9 : i32
    %79 = vector.broadcast %c9_i32 : i32 to vector<128x128xi32>
    %80 = arith.addi %77, %79 : vector<128x128xi32>
    %81 = arith.cmpi eq, %78, %80 : vector<128x128xi32>
    %c8_i32 = arith.constant 8 : i32
    %82 = vector.broadcast %c8_i32 : i32 to vector<128x128xi32>
    %83 = arith.cmpi slt, %77, %82 : vector<128x128xi32>
    %84 = arith.andi %81, %83 : vector<128x128xi1>
    %85 = arith.extui %84 : vector<128x128xi1> to vector<128x128xi32>
    %86 = arith.sitofp %85 : vector<128x128xi32> to vector<128x128xf32>
    %cst_53 = arith.constant dense<0.000000e+00> : vector<8x128xf32>
    %87 = tpu.matmul %61, %86, %cst_53 {dimension_numbers = #tpu.dot_dimension_numbers<[1], [0], [0], [1], [0, 0, 1, 1], [], []>} : vector<8x128xf32>, vector<128x128xf32>, vector<8x128xf32> -> vector<8x128xf32>
    %88 = arith.addf %1, %87 : vector<8x128xf32>
    %c17_i32 = arith.constant 17 : i32
    %89 = vector.broadcast %c17_i32 : i32 to vector<8x128xi32>
    %90 = arith.cmpi eq, %4, %89 : vector<8x128xi32>
    %91 = arith.extui %90 : vector<8x128xi1> to vector<8x128xi32>
    %92 = arith.sitofp %91 : vector<8x128xi32> to vector<8x128xf32>
    %93 = vector.broadcast %76 : vector<8x1xf32> to vector<8x128xf32>
    %94 = arith.mulf %93, %92 : vector<8x128xf32>
    %95 = arith.addf %88, %94 : vector<8x128xf32>
    %c1_54 = arith.constant 1 : index
    %c0_55 = arith.constant 0 : index
    %c0_56 = arith.constant 0 : index
    %c0_57 = arith.constant 0 : index
    %96 = vector.load %arg2[%c1_54, %c0_55, %c0_56, %c0_57] : memref<3x4x128x128xf32, #tpu.memory_space<vmem>>, vector<1x1x128x128xf32>
    %97 = vector.shape_cast %96 : vector<1x1x128x128xf32> to vector<128x128xf32>
    %cst_58 = arith.constant dense<0.000000e+00> : vector<8x128xf32>
    %98 = tpu.matmul %95, %97, %cst_58 {dimension_numbers = #tpu.dot_dimension_numbers<[1], [0], [0], [1], [0, 0, 1, 1], [], []>} : vector<8x128xf32>, vector<128x128xf32>, vector<8x128xf32> -> vector<8x128xf32>
    %c1_59 = arith.constant 1 : index
    %c0_60 = arith.constant 0 : index
    %c0_61 = arith.constant 0 : index
    %c0_62 = arith.constant 0 : index
    %99 = vector.load %arg3[%c1_59, %c0_60, %c0_61, %c0_62] : memref<3x4x1x128xf32, #tpu.memory_space<vmem>>, vector<1x1x1x128xf32>
    %100 = vector.shape_cast %99 : vector<1x1x1x128xf32> to vector<1x128xf32>
    %101 = vector.broadcast %100 : vector<1x128xf32> to vector<8x128xf32>
    %102 = arith.addf %98, %101 : vector<8x128xf32>
    %cst_63 = arith.constant 0.000000e+00 : f32
    %103 = vector.broadcast %cst_63 : f32 to vector<8x128xf32>
    %104 = arith.cmpf oge, %102, %103 : vector<8x128xf32>
    %cst_64 = arith.constant 0.229166672 : f32
    %105 = vector.broadcast %cst_64 : f32 to vector<8x128xf32>
    %106 = arith.mulf %105, %102 : vector<8x128xf32>
    %107 = arith.select %104, %102, %106 : vector<8x128xi1>, vector<8x128xf32>
    %c1_65 = arith.constant 1 : index
    %c1_66 = arith.constant 1 : index
    %c0_67 = arith.constant 0 : index
    %c0_68 = arith.constant 0 : index
    %108 = vector.load %arg2[%c1_65, %c1_66, %c0_67, %c0_68] : memref<3x4x128x128xf32, #tpu.memory_space<vmem>>, vector<1x1x128x128xf32>
    %109 = vector.shape_cast %108 : vector<1x1x128x128xf32> to vector<128x128xf32>
    %cst_69 = arith.constant dense<0.000000e+00> : vector<8x128xf32>
    %110 = tpu.matmul %107, %109, %cst_69 {dimension_numbers = #tpu.dot_dimension_numbers<[1], [0], [0], [1], [0, 0, 1, 1], [], []>} : vector<8x128xf32>, vector<128x128xf32>, vector<8x128xf32> -> vector<8x128xf32>
    %c1_70 = arith.constant 1 : index
    %c1_71 = arith.constant 1 : index
    %c0_72 = arith.constant 0 : index
    %c0_73 = arith.constant 0 : index
    %111 = vector.load %arg3[%c1_70, %c1_71, %c0_72, %c0_73] : memref<3x4x1x128xf32, #tpu.memory_space<vmem>>, vector<1x1x1x128xf32>
    %112 = vector.shape_cast %111 : vector<1x1x1x128xf32> to vector<1x128xf32>
    %113 = vector.broadcast %112 : vector<1x128xf32> to vector<8x128xf32>
    %114 = arith.addf %110, %113 : vector<8x128xf32>
    %cst_74 = arith.constant 0.000000e+00 : f32
    %115 = vector.broadcast %cst_74 : f32 to vector<8x128xf32>
    %116 = arith.cmpf oge, %114, %115 : vector<8x128xf32>
    %cst_75 = arith.constant 0.229166672 : f32
    %117 = vector.broadcast %cst_75 : f32 to vector<8x128xf32>
    %118 = arith.mulf %117, %114 : vector<8x128xf32>
    %119 = arith.select %116, %114, %118 : vector<8x128xi1>, vector<8x128xf32>
    %c1_76 = arith.constant 1 : index
    %c2_77 = arith.constant 2 : index
    %c0_78 = arith.constant 0 : index
    %c0_79 = arith.constant 0 : index
    %120 = vector.load %arg2[%c1_76, %c2_77, %c0_78, %c0_79] : memref<3x4x128x128xf32, #tpu.memory_space<vmem>>, vector<1x1x128x128xf32>
    %121 = vector.shape_cast %120 : vector<1x1x128x128xf32> to vector<128x128xf32>
    %cst_80 = arith.constant dense<0.000000e+00> : vector<8x128xf32>
    %122 = tpu.matmul %119, %121, %cst_80 {dimension_numbers = #tpu.dot_dimension_numbers<[1], [0], [0], [1], [0, 0, 1, 1], [], []>} : vector<8x128xf32>, vector<128x128xf32>, vector<8x128xf32> -> vector<8x128xf32>
    %c1_81 = arith.constant 1 : index
    %c2_82 = arith.constant 2 : index
    %c0_83 = arith.constant 0 : index
    %c0_84 = arith.constant 0 : index
    %123 = vector.load %arg3[%c1_81, %c2_82, %c0_83, %c0_84] : memref<3x4x1x128xf32, #tpu.memory_space<vmem>>, vector<1x1x1x128xf32>
    %124 = vector.shape_cast %123 : vector<1x1x1x128xf32> to vector<1x128xf32>
    %125 = vector.broadcast %124 : vector<1x128xf32> to vector<8x128xf32>
    %126 = arith.addf %122, %125 : vector<8x128xf32>
    %cst_85 = arith.constant 0.000000e+00 : f32
    %127 = vector.broadcast %cst_85 : f32 to vector<8x128xf32>
    %128 = arith.cmpf oge, %126, %127 : vector<8x128xf32>
    %cst_86 = arith.constant 0.229166672 : f32
    %129 = vector.broadcast %cst_86 : f32 to vector<8x128xf32>
    %130 = arith.mulf %129, %126 : vector<8x128xf32>
    %131 = arith.select %128, %126, %130 : vector<8x128xi1>, vector<8x128xf32>
    %c1_87 = arith.constant 1 : index
    %c3_88 = arith.constant 3 : index
    %c0_89 = arith.constant 0 : index
    %c0_90 = arith.constant 0 : index
    %132 = vector.load %arg2[%c1_87, %c3_88, %c0_89, %c0_90] : memref<3x4x128x128xf32, #tpu.memory_space<vmem>>, vector<1x1x128x128xf32>
    %133 = vector.shape_cast %132 : vector<1x1x128x128xf32> to vector<128x128xf32>
    %cst_91 = arith.constant dense<0.000000e+00> : vector<8x128xf32>
    %134 = tpu.matmul %131, %133, %cst_91 {dimension_numbers = #tpu.dot_dimension_numbers<[1], [0], [0], [1], [0, 0, 1, 1], [], []>} : vector<8x128xf32>, vector<128x128xf32>, vector<8x128xf32> -> vector<8x128xf32>
    %c1_92 = arith.constant 1 : index
    %c3_93 = arith.constant 3 : index
    %c0_94 = arith.constant 0 : index
    %c0_95 = arith.constant 0 : index
    %135 = vector.load %arg3[%c1_92, %c3_93, %c0_94, %c0_95] : memref<3x4x1x128xf32, #tpu.memory_space<vmem>>, vector<1x1x1x128xf32>
    %136 = vector.shape_cast %135 : vector<1x1x1x128xf32> to vector<1x128xf32>
    %137 = vector.broadcast %136 : vector<1x128xf32> to vector<8x128xf32>
    %138 = arith.addf %134, %137 : vector<8x128xf32>
    %cst_96 = arith.constant 0.000000e+00 : f32
    %139 = vector.broadcast %cst_96 : f32 to vector<8x128xf32>
    %140 = arith.cmpf oge, %138, %139 : vector<8x128xf32>
    %cst_97 = arith.constant 0.229166672 : f32
    %141 = vector.broadcast %cst_97 : f32 to vector<8x128xf32>
    %142 = arith.mulf %141, %138 : vector<8x128xf32>
    %143 = arith.select %140, %138, %142 : vector<8x128xi1>, vector<8x128xf32>
    %cst_98 = arith.constant dense<0xFF800000> : vector<8xf32>
    %144 = vector.multi_reduction <maximumf>, %143, %cst_98 [1] : vector<8x128xf32> to vector<8xf32>
    %145 = vector.shape_cast %144 : vector<8xf32> to vector<8x1xf32>
    %146 = vector.broadcast %145 : vector<8x1xf32> to vector<8x128xf32>
    %147 = arith.subf %143, %146 : vector<8x128xf32>
    %148 = math.exp %147 : vector<8x128xf32>
    %cst_99 = arith.constant dense<0.000000e+00> : vector<8xf32>
    %149 = vector.multi_reduction <add>, %148, %cst_99 [1] : vector<8x128xf32> to vector<8xf32>
    %150 = vector.shape_cast %149 : vector<8xf32> to vector<8x1xf32>
    %151 = vector.broadcast %150 : vector<8x1xf32> to vector<8x128xf32>
    %152 = arith.divf %148, %151 : vector<8x128xf32>
    %c1_100 = arith.constant 1 : index
    %c0_101 = arith.constant 0 : index
    %c0_102 = arith.constant 0 : index
    %153 = vector.load %arg4[%c1_100, %c0_101, %c0_102] : memref<3x8x128xf32, #tpu.memory_space<vmem>>, vector<1x8x128xf32>
    %154 = vector.shape_cast %153 : vector<1x8x128xf32> to vector<8x128xf32>
    %155 = vector.shape_cast %152 : vector<8x128xf32> to vector<1x8x128xf32>
    tpu.vector_store %arg4[%c1_100, %c0_101, %c0_102], %155 {strides = array<i32>} : memref<3x8x128xf32, #tpu.memory_space<vmem>>, vector<1x8x128xf32>,
    %156 = vector.broadcast %145 : vector<8x1xf32> to vector<8x128xf32>
    %157 = arith.cmpf oeq, %143, %156 : vector<8x128xf32>
    %c128_i32_103 = arith.constant 128 : i32
    %158 = vector.broadcast %c128_i32_103 : i32 to vector<8x128xi32>
    %159 = arith.select %157, %4, %158 : vector<8x128xi1>, vector<8x128xi32>
    %cst_104 = arith.constant dense<2147483647> : vector<8xi32>
    %160 = vector.multi_reduction <minsi>, %159, %cst_104 [1] : vector<8x128xi32> to vector<8xi32>
    %161 = vector.shape_cast %160 : vector<8xi32> to vector<8x1xi32>
    %162 = vector.broadcast %161 : vector<8x1xi32> to vector<8x128xi32>
    %163 = arith.cmpi eq, %4, %162 : vector<8x128xi32>
    %cst_105 = arith.constant 0.000000e+00 : f32
    %164 = vector.broadcast %cst_105 : f32 to vector<8x128xf32>
    %165 = arith.select %163, %3, %164 : vector<8x128xi1>, vector<8x128xf32>
    %cst_106 = arith.constant dense<0.000000e+00> : vector<8xf32>
    %166 = vector.multi_reduction <add>, %165, %cst_106 [1] : vector<8x128xf32> to vector<8xf32>
    %167 = vector.shape_cast %166 : vector<8xf32> to vector<8x1xf32>
    %168 = tpu.iota {dimensions = array<i32: 0>} : vector<128x128xi32>
    %169 = tpu.iota {dimensions = array<i32: 1>} : vector<128x128xi32>
    %c18_i32 = arith.constant 18 : i32
    %170 = vector.broadcast %c18_i32 : i32 to vector<128x128xi32>
    %171 = arith.addi %168, %170 : vector<128x128xi32>
    %172 = arith.cmpi eq, %169, %171 : vector<128x128xi32>
    %c8_i32_107 = arith.constant 8 : i32
    %173 = vector.broadcast %c8_i32_107 : i32 to vector<128x128xi32>
    %174 = arith.cmpi slt, %168, %173 : vector<128x128xi32>
    %175 = arith.andi %172, %174 : vector<128x128xi1>
    %176 = arith.extui %175 : vector<128x128xi1> to vector<128x128xi32>
    %177 = arith.sitofp %176 : vector<128x128xi32> to vector<128x128xf32>
    %cst_108 = arith.constant dense<0.000000e+00> : vector<8x128xf32>
    %178 = tpu.matmul %152, %177, %cst_108 {dimension_numbers = #tpu.dot_dimension_numbers<[1], [0], [0], [1], [0, 0, 1, 1], [], []>} : vector<8x128xf32>, vector<128x128xf32>, vector<8x128xf32> -> vector<8x128xf32>
    %179 = arith.addf %95, %178 : vector<8x128xf32>
    %c26_i32 = arith.constant 26 : i32
    %180 = vector.broadcast %c26_i32 : i32 to vector<8x128xi32>
    %181 = arith.cmpi eq, %4, %180 : vector<8x128xi32>
    %182 = arith.extui %181 : vector<8x128xi1> to vector<8x128xi32>
    %183 = arith.sitofp %182 : vector<8x128xi32> to vector<8x128xf32>
    %184 = vector.broadcast %167 : vector<8x1xf32> to vector<8x128xf32>
    %185 = arith.mulf %184, %183 : vector<8x128xf32>
    %186 = arith.addf %179, %185 : vector<8x128xf32>
    %c2_109 = arith.constant 2 : index
    %c0_110 = arith.constant 0 : index
    %c0_111 = arith.constant 0 : index
    %c0_112 = arith.constant 0 : index
    %187 = vector.load %arg2[%c2_109, %c0_110, %c0_111, %c0_112] : memref<3x4x128x128xf32, #tpu.memory_space<vmem>>, vector<1x1x128x128xf32>
    %188 = vector.shape_cast %187 : vector<1x1x128x128xf32> to vector<128x128xf32>
    %cst_113 = arith.constant dense<0.000000e+00> : vector<8x128xf32>
    %189 = tpu.matmul %186, %188, %cst_113 {dimension_numbers = #tpu.dot_dimension_numbers<[1], [0], [0], [1], [0, 0, 1, 1], [], []>} : vector<8x128xf32>, vector<128x128xf32>, vector<8x128xf32> -> vector<8x128xf32>
    %c2_114 = arith.constant 2 : index
    %c0_115 = arith.constant 0 : index
    %c0_116 = arith.constant 0 : index
    %c0_117 = arith.constant 0 : index
    %190 = vector.load %arg3[%c2_114, %c0_115, %c0_116, %c0_117] : memref<3x4x1x128xf32, #tpu.memory_space<vmem>>, vector<1x1x1x128xf32>
    %191 = vector.shape_cast %190 : vector<1x1x1x128xf32> to vector<1x128xf32>
    %192 = vector.broadcast %191 : vector<1x128xf32> to vector<8x128xf32>
    %193 = arith.addf %189, %192 : vector<8x128xf32>
    %cst_118 = arith.constant 0.000000e+00 : f32
    %194 = vector.broadcast %cst_118 : f32 to vector<8x128xf32>
    %195 = arith.cmpf oge, %193, %194 : vector<8x128xf32>
    %cst_119 = arith.constant 0.229166672 : f32
    %196 = vector.broadcast %cst_119 : f32 to vector<8x128xf32>
    %197 = arith.mulf %196, %193 : vector<8x128xf32>
    %198 = arith.select %195, %193, %197 : vector<8x128xi1>, vector<8x128xf32>
    %c2_120 = arith.constant 2 : index
    %c1_121 = arith.constant 1 : index
    %c0_122 = arith.constant 0 : index
    %c0_123 = arith.constant 0 : index
    %199 = vector.load %arg2[%c2_120, %c1_121, %c0_122, %c0_123] : memref<3x4x128x128xf32, #tpu.memory_space<vmem>>, vector<1x1x128x128xf32>
    %200 = vector.shape_cast %199 : vector<1x1x128x128xf32> to vector<128x128xf32>
    %cst_124 = arith.constant dense<0.000000e+00> : vector<8x128xf32>
    %201 = tpu.matmul %198, %200, %cst_124 {dimension_numbers = #tpu.dot_dimension_numbers<[1], [0], [0], [1], [0, 0, 1, 1], [], []>} : vector<8x128xf32>, vector<128x128xf32>, vector<8x128xf32> -> vector<8x128xf32>
    %c2_125 = arith.constant 2 : index
    %c1_126 = arith.constant 1 : index
    %c0_127 = arith.constant 0 : index
    %c0_128 = arith.constant 0 : index
    %202 = vector.load %arg3[%c2_125, %c1_126, %c0_127, %c0_128] : memref<3x4x1x128xf32, #tpu.memory_space<vmem>>, vector<1x1x1x128xf32>
    %203 = vector.shape_cast %202 : vector<1x1x1x128xf32> to vector<1x128xf32>
    %204 = vector.broadcast %203 : vector<1x128xf32> to vector<8x128xf32>
    %205 = arith.addf %201, %204 : vector<8x128xf32>
    %cst_129 = arith.constant 0.000000e+00 : f32
    %206 = vector.broadcast %cst_129 : f32 to vector<8x128xf32>
    %207 = arith.cmpf oge, %205, %206 : vector<8x128xf32>
    %cst_130 = arith.constant 0.229166672 : f32
    %208 = vector.broadcast %cst_130 : f32 to vector<8x128xf32>
    %209 = arith.mulf %208, %205 : vector<8x128xf32>
    %210 = arith.select %207, %205, %209 : vector<8x128xi1>, vector<8x128xf32>
    %c2_131 = arith.constant 2 : index
    %c2_132 = arith.constant 2 : index
    %c0_133 = arith.constant 0 : index
    %c0_134 = arith.constant 0 : index
    %211 = vector.load %arg2[%c2_131, %c2_132, %c0_133, %c0_134] : memref<3x4x128x128xf32, #tpu.memory_space<vmem>>, vector<1x1x128x128xf32>
    %212 = vector.shape_cast %211 : vector<1x1x128x128xf32> to vector<128x128xf32>
    %cst_135 = arith.constant dense<0.000000e+00> : vector<8x128xf32>
    %213 = tpu.matmul %210, %212, %cst_135 {dimension_numbers = #tpu.dot_dimension_numbers<[1], [0], [0], [1], [0, 0, 1, 1], [], []>} : vector<8x128xf32>, vector<128x128xf32>, vector<8x128xf32> -> vector<8x128xf32>
    %c2_136 = arith.constant 2 : index
    %c2_137 = arith.constant 2 : index
    %c0_138 = arith.constant 0 : index
    %c0_139 = arith.constant 0 : index
    %214 = vector.load %arg3[%c2_136, %c2_137, %c0_138, %c0_139] : memref<3x4x1x128xf32, #tpu.memory_space<vmem>>, vector<1x1x1x128xf32>
    %215 = vector.shape_cast %214 : vector<1x1x1x128xf32> to vector<1x128xf32>
    %216 = vector.broadcast %215 : vector<1x128xf32> to vector<8x128xf32>
    %217 = arith.addf %213, %216 : vector<8x128xf32>
    %cst_140 = arith.constant 0.000000e+00 : f32
    %218 = vector.broadcast %cst_140 : f32 to vector<8x128xf32>
    %219 = arith.cmpf oge, %217, %218 : vector<8x128xf32>
    %cst_141 = arith.constant 0.229166672 : f32
    %220 = vector.broadcast %cst_141 : f32 to vector<8x128xf32>
    %221 = arith.mulf %220, %217 : vector<8x128xf32>
    %222 = arith.select %219, %217, %221 : vector<8x128xi1>, vector<8x128xf32>
    %c2_142 = arith.constant 2 : index
    %c3_143 = arith.constant 3 : index
    %c0_144 = arith.constant 0 : index
    %c0_145 = arith.constant 0 : index
    %223 = vector.load %arg2[%c2_142, %c3_143, %c0_144, %c0_145] : memref<3x4x128x128xf32, #tpu.memory_space<vmem>>, vector<1x1x128x128xf32>
    %224 = vector.shape_cast %223 : vector<1x1x128x128xf32> to vector<128x128xf32>
    %cst_146 = arith.constant dense<0.000000e+00> : vector<8x128xf32>
    %225 = tpu.matmul %222, %224, %cst_146 {dimension_numbers = #tpu.dot_dimension_numbers<[1], [0], [0], [1], [0, 0, 1, 1], [], []>} : vector<8x128xf32>, vector<128x128xf32>, vector<8x128xf32> -> vector<8x128xf32>
    %c2_147 = arith.constant 2 : index
    %c3_148 = arith.constant 3 : index
    %c0_149 = arith.constant 0 : index
    %c0_150 = arith.constant 0 : index
    %226 = vector.load %arg3[%c2_147, %c3_148, %c0_149, %c0_150] : memref<3x4x1x128xf32, #tpu.memory_space<vmem>>, vector<1x1x1x128xf32>
    %227 = vector.shape_cast %226 : vector<1x1x1x128xf32> to vector<1x128xf32>
    %228 = vector.broadcast %227 : vector<1x128xf32> to vector<8x128xf32>
    %229 = arith.addf %225, %228 : vector<8x128xf32>
    %cst_151 = arith.constant 0.000000e+00 : f32
    %230 = vector.broadcast %cst_151 : f32 to vector<8x128xf32>
    %231 = arith.cmpf oge, %229, %230 : vector<8x128xf32>
    %cst_152 = arith.constant 0.229166672 : f32
    %232 = vector.broadcast %cst_152 : f32 to vector<8x128xf32>
    %233 = arith.mulf %232, %229 : vector<8x128xf32>
    %234 = arith.select %231, %229, %233 : vector<8x128xi1>, vector<8x128xf32>
    %cst_153 = arith.constant dense<0xFF800000> : vector<8xf32>
    %235 = vector.multi_reduction <maximumf>, %234, %cst_153 [1] : vector<8x128xf32> to vector<8xf32>
    %236 = vector.shape_cast %235 : vector<8xf32> to vector<8x1xf32>
    %237 = vector.broadcast %236 : vector<8x1xf32> to vector<8x128xf32>
    %238 = arith.subf %234, %237 : vector<8x128xf32>
    %239 = math.exp %238 : vector<8x128xf32>
    %cst_154 = arith.constant dense<0.000000e+00> : vector<8xf32>
    %240 = vector.multi_reduction <add>, %239, %cst_154 [1] : vector<8x128xf32> to vector<8xf32>
    %241 = vector.shape_cast %240 : vector<8xf32> to vector<8x1xf32>
    %242 = vector.broadcast %241 : vector<8x1xf32> to vector<8x128xf32>
    %243 = arith.divf %239, %242 : vector<8x128xf32>
    %c2_155 = arith.constant 2 : index
    %c0_156 = arith.constant 0 : index
    %c0_157 = arith.constant 0 : index
    %244 = vector.load %arg4[%c2_155, %c0_156, %c0_157] : memref<3x8x128xf32, #tpu.memory_space<vmem>>, vector<1x8x128xf32>
    %245 = vector.shape_cast %244 : vector<1x8x128xf32> to vector<8x128xf32>
    %246 = vector.shape_cast %243 : vector<8x128xf32> to vector<1x8x128xf32>
    tpu.vector_store %arg4[%c2_155, %c0_156, %c0_157], %246 {strides = array<i32>} : memref<3x8x128xf32, #tpu.memory_space<vmem>>, vector<1x8x128xf32>,
    return
  }
  func.func @transform_0(%arg0: i32) -> (i32, i32, i32) {
    %c0_i32 = arith.constant 0 : i32
    %c0_i32_0 = arith.constant 0 : i32
    %c0_i32_1 = arith.constant 0 : i32
    %c0_i32_2 = arith.constant 0 : i32
    return %c0_i32, %c0_i32_0, %c0_i32_1 : i32, i32, i32
  }
  func.func @transform_1(%arg0: i32) -> (i32, i32, i32, i32) {
    %c0_i32 = arith.constant 0 : i32
    %c0_i32_0 = arith.constant 0 : i32
    %c0_i32_1 = arith.constant 0 : i32
    %c0_i32_2 = arith.constant 0 : i32
    %c0_i32_3 = arith.constant 0 : i32
    return %c0_i32, %c0_i32_0, %c0_i32_1, %c0_i32_2 : i32, i32, i32, i32
  }
  func.func @transform_2(%arg0: i32) -> (i32, i32, i32, i32) {
    %c0_i32 = arith.constant 0 : i32
    %c0_i32_0 = arith.constant 0 : i32
    %c0_i32_1 = arith.constant 0 : i32
    %c0_i32_2 = arith.constant 0 : i32
    %c0_i32_3 = arith.constant 0 : i32
    return %c0_i32, %c0_i32_0, %c0_i32_1, %c0_i32_2 : i32, i32, i32, i32
  }
  func.func @transform_3(%arg0: i32) -> (i32, i32, i32) {
    %c0_i32 = arith.constant 0 : i32
    %c0_i32_0 = arith.constant 0 : i32
    %c0_i32_1 = arith.constant 0 : i32
    %c0_i32_2 = arith.constant 0 : i32
    return %c0_i32, %c0_i32_0, %c0_i32_1 : i32, i32, i32
  }
}

</mosaic_0001>

<bundles_post_ra>
// kernel: forward.1
= control target key start
LH: loop header
LB: loop body
LE: loop exit
PB: predicated region body
PF: predicated region fallthrough
CT: control target
= control target key end

     0   :  { %8 = vsyncpa [#allocation3], 0  ;;  %s2630_s12 = smov [#allocation2]   ;;  %s2876_s0 = inlined_call_operand.vmem [shape: f32[2,8,128], index: 0, kind: input, shape index: {}]   ;;  %s2877_s1 = inlined_call_operand.hbm [shape: f32[3,4,128,128], index: 1, kind: input, shape index: {}]   ;;  %s2878_s2 = inlined_call_operand.vmem [shape: f32[3,4,1,128], index: 2, kind: input, shape index: {}]   ;;  %s2879_s3 = inlined_call_operand.vmem [shape: f32[3,8,128], index: 3, kind: output, shape index: {}]  }
   0x1   :  { %s16_s13 = sshll.u32 %s2630_s12, 4  ;;  %s2606_s16 = scalar_lea.hbm %s2877_s1, 24576  ;;  %s17_s13 = int_to_ptr.vmem [resolvable:$true] %s16_s13 }
   0x2   :  { %p2607_p0 = scmp.ne.s32.totalorder %s2877_s1, %s2606_s16  ;;  %p2610_p1 = scmp.lt.u32.totalorder %s2606_s16, %s2877_s1 }
   0x4   :  { %p2612_p2 = pnand %p2610_p1, %p2607_p0 }
   0x6   :  { %2615 = shalt.err (!%p2612_p2)
}
   0x7   :  { %s2616_s21 = scalar_lea.vmem %s17_s13, 24576  ;;  %p2621_p4 = scmp.lt.s32.totalorder %s17_s13, %s17_s13 }
   0x8   :  { %p2617_p3 = scmp.ne.s32.totalorder %s17_s13, %s2616_s21  ;;  %p2622_p5 = scmp.lt.s32.totalorder %s2616_s21, %s2616_s21 }
   0xa   :  { %p2623_p6 = por %p2622_p5, %p2621_p4 }
   0xc   :  { %p2624_p7 = pnand %p2623_p6, %p2617_p3 }
   0xe   :  { %2627 = shalt.err (!%p2624_p7)
}
   0xf   :  { %s2631_s22 = smov 128   ;;  %s2632_s23 = smov 8  }
  0x10   :  { %22 = dma.hbm_to_vmem [thread:$0]  %s2877_s1, 24576, %s17_s13, [#allocation3], %s2631_s22, %s2631_s22, %s2632_s23  }
  0x11   :  { %2628 = dma.done.wait [#allocation3], 24576  }
  0x12   :  { %2629 = vsyncadd [#allocation3], 4294942720  ;;  %v2633_v0 = vmov 0.0|0.0   ;;  %vm2634_vm0 = vmmov 0   ;;  %v2635_v1 = vmov 0.0   ;;  %v33_v2 = vld [vmem:[#allocation2] sm:$0xff] }
  0x13   :  { %2299 = vmatprep.subr.bf16.mxu0 %v2633_v0  ;;  %1901 = vmatprep.mubr.msk.f32.mxu0 %vm2634_vm0, %v2635_v1  ;;  %v34_v3 = vld [vmem:[#allocation2 + $0x8] sm:$0xff]  ;;  %v35_v4 = vld [vmem:[#allocation2 + $0x10] sm:$0xff]  ;;  %v36_v6 = vld [vmem:[#allocation2 + $0x18] sm:$0xff] }
  0x14   :  { %2323 = vmatprep.subr.bf16.mxu1 %v2633_v0  ;;  %1936 = vmatprep.mubr.msk.f32.mxu1 %vm2634_vm0, %v2635_v1  ;;  %v2300_v5 = vpack.c.bf16 %v34_v3, %v33_v2  ;;  %v2303_v7 = vpack.c.bf16 %v36_v6, %v35_v4  ;;  %v37_v8 = vld [vmem:[#allocation2 + $0x20] sm:$0xff]  ;;  %v38_v9 = vld [vmem:[#allocation2 + $0x28] sm:$0xff]  ;;  %v132_v12 = vld [vmem:[#allocation2 + $0x90] sm:$0xff] }
  0x15   :  { %v130_v10 = vld [vmem:[#allocation2 + $0x80] sm:$0xff]  ;;  %v131_v11 = vld [vmem:[#allocation2 + $0x88] sm:$0xff]  ;;  %v133_v13 = vld [vmem:[#allocation2 + $0x98] sm:$0xff]  ;;  %v2306_v14 = vpack.c.bf16 %v38_v9, %v37_v8 }
  0x16   :  { %2301 = vmatpush3.bf16.msra.mxu0 %v2300_v5  ;;  %v2324_v15 = vpack.c.bf16 %v131_v11, %v130_v10  ;;  %v39_v16 = vld [vmem:[#allocation2 + $0x30] sm:$0xff]  ;;  %v40_v17 = vld [vmem:[#allocation2 + $0x38] sm:$0xff]  ;;  %v2327_v18 = vpack.c.bf16 %v133_v13, %v132_v12  ;;  %v134_v19 = vld [vmem:[#allocation2 + $0xa0] sm:$0xff] }
  0x17   :  { %2302 = vmatprep.subr.bf16.mxu0 %v2633_v0  ;;  %v135_v20 = vld [vmem:[#allocation2 + $0xa8] sm:$0xff]  ;;  %v2309_v21 = vpack.c.bf16 %v40_v17, %v39_v16  ;;  %v41_v22 = vld [vmem:[#allocation2 + $0x40] sm:$0xff]  ;;  %v136_v25 = vld [vmem:[#allocation2 + $0xb0] sm:$0xff] }
  0x18   :  { %2325 = vmatpush3.bf16.msra.mxu1 %v2324_v15  ;;  %v42_v23 = vld [vmem:[#allocation2 + $0x48] sm:$0xff]  ;;  %v2330_v24 = vpack.c.bf16 %v135_v20, %v134_v19  ;;  %v137_v26 = vld [vmem:[#allocation2 + $0xb8] sm:$0xff]  ;;  %v43_v28 = vld [vmem:[#allocation2 + $0x50] sm:$0xff] }
  0x19   :  { %2326 = vmatprep.subr.bf16.mxu1 %v2633_v0  ;;  %v2312_v27 = vpack.c.bf16 %v42_v23, %v41_v22  ;;  %v44_v29 = vld [vmem:[#allocation2 + $0x58] sm:$0xff]  ;;  %v2333_v30 = vpack.c.bf16 %v137_v26, %v136_v25  ;;  %v138_v31 = vld [vmem:[#allocation2 + $0xc0] sm:$0xff]  ;;  %v139_v32 = vld [vmem:[#allocation2 + $0xc8] sm:$0xff] }
  0x1a   :  { %2304 = vmatpush3.bf16.msra.mxu0 %v2303_v7  ;;  %v2315_v33 = vpack.c.bf16 %v44_v29, %v43_v28  ;;  %v45_v34 = vld [vmem:[#allocation2 + $0x60] sm:$0xff]  ;;  %v46_v35 = vld [vmem:[#allocation2 + $0x68] sm:$0xff]  ;;  %v2336_v36 = vpack.c.bf16 %v139_v32, %v138_v31  ;;  %v140_v37 = vld [vmem:[#allocation2 + $0xd0] sm:$0xff] }
  0x1b   :  { %2305 = vmatprep.subr.bf16.mxu0 %v2633_v0  ;;  %v141_v38 = vld [vmem:[#allocation2 + $0xd8] sm:$0xff]  ;;  %v2318_v39 = vpack.c.bf16 %v46_v35, %v45_v34  ;;  %v47_v40 = vld [vmem:[#allocation2 + $0x70] sm:$0xff]  ;;  %v142_v43 = vld [vmem:[#allocation2 + $0xe0] sm:$0xff] }
  0x1c   :  { %2328 = vmatpush3.bf16.msra.mxu1 %v2327_v18  ;;  %v48_v41 = vld [vmem:[#allocation2 + $0x78] sm:$0xff]  ;;  %v2339_v42 = vpack.c.bf16 %v141_v38, %v140_v37  ;;  %v143_v44 = vld [vmem:[#allocation2 + $0xe8] sm:$0xff]  ;;  %v2691_v47 = vld [vmem:[%s2876_s0] sm:$0xff] }
  0x1d   :  { %2329 = vmatprep.subr.bf16.mxu1 %v2633_v0  ;;  %v2321_v45 = vpack.c.bf16 %v48_v41, %v47_v40  ;;  %v2342_v46 = vpack.c.bf16 %v143_v44, %v142_v43  ;;  %v144_v48 = vld [vmem:[#allocation2 + $0xf0] sm:$0xff]  ;;  %v145_v49 = vld [vmem:[#allocation2 + $0xf8] sm:$0xff]  ;;  %v228_v51 = vld [vmem:[#allocation2 + $0x100] sm:$0xff] }
  0x1e   :  { %2307 = vmatpush3.bf16.msra.mxu0 %v2306_v14  ;;  %v2345_v50 = vpack.c.bf16 %v145_v49, %v144_v48  ;;  %v229_v52 = vld [vmem:[#allocation2 + $0x108] sm:$0xff]  ;;  %v230_v53 = vld [vmem:[#allocation2 + $0x110] sm:$0xff]  ;;  %v231_v55 = vld [vmem:[#allocation2 + $0x118] sm:$0xff] }
  0x1f   :  { %2308 = vmatprep.subr.bf16.mxu0 %v2633_v0  ;;  %v2348_v54 = vpack.c.bf16 %v229_v52, %v228_v51  ;;  %v2351_v56 = vpack.c.bf16 %v231_v55, %v230_v53  ;;  %v232_v57 = vld [vmem:[#allocation2 + $0x120] sm:$0xff]  ;;  %v233_v58 = vld [vmem:[#allocation2 + $0x128] sm:$0xff]  ;;  %v234_v60 = vld [vmem:[#allocation2 + $0x130] sm:$0xff] }
  0x20   :  { %2331 = vmatpush3.bf16.msra.mxu1 %v2330_v24  ;;  %v2354_v59 = vpack.c.bf16 %v233_v58, %v232_v57  ;;  %v235_v61 = vld [vmem:[#allocation2 + $0x138] sm:$0xff]  ;;  %v236_v63 = vld [vmem:[#allocation2 + $0x140] sm:$0xff]  ;;  %v237_v2 = vld [vmem:[#allocation2 + $0x148] sm:$0xff] }
  0x21   :  { %2332 = vmatprep.subr.bf16.mxu1 %v2633_v0  ;;  %v2357_v62 = vpack.c.bf16 %v235_v61, %v234_v60  ;;  %v2360_v3 = vpack.c.bf16 %v237_v2, %v236_v63  ;;  %v238_v4 = vld [vmem:[#allocation2 + $0x150] sm:$0xff]  ;;  %v239_v5 = vld [vmem:[#allocation2 + $0x158] sm:$0xff]  ;;  %v240_v7 = vld [vmem:[#allocation2 + $0x160] sm:$0xff] }
  0x22   :  { %2310 = vmatpush3.bf16.msra.mxu0 %v2309_v21  ;;  %v2363_v6 = vpack.c.bf16 %v239_v5, %v238_v4  ;;  %v241_v8 = vld [vmem:[#allocation2 + $0x168] sm:$0xff]  ;;  %v1630_v10 = vld [vmem:[%s2878_s2] ss:$0 sm:$0xff]  ;;  %v242_v16 = vld [vmem:[#allocation2 + $0x170] sm:$0xff] }
  0x23   :  { %2311 = vmatprep.subr.bf16.mxu0 %v2633_v0  ;;  %v2366_v9 = vpack.c.bf16 %v241_v8, %v240_v7  ;;  %v243_v17 = vld [vmem:[#allocation2 + $0x178] sm:$0xff]  ;;  %v326_v19 = vld [vmem:[#allocation2 + $0x180] sm:$0xff]  ;;  %v327_v20 = vld [vmem:[#allocation2 + $0x188] sm:$0xff] }
  0x24   :  { %2334 = vmatpush3.bf16.msra.mxu1 %v2333_v30  ;;  %v2369_v18 = vpack.c.bf16 %v243_v17, %v242_v16  ;;  %v328_v21 = vld [vmem:[#allocation2 + $0x190] sm:$0xff]  ;;  %v2372_v22 = vpack.c.bf16 %v327_v20, %v326_v19  ;;  %v329_v23 = vld [vmem:[#allocation2 + $0x198] sm:$0xff]  ;;  %v330_v25 = vld [vmem:[#allocation2 + $0x1a0] sm:$0xff] }
  0x25   :  { %2335 = vmatprep.subr.bf16.mxu1 %v2633_v0  ;;  %v2375_v24 = vpack.c.bf16 %v329_v23, %v328_v21  ;;  %v331_v26 = vld [vmem:[#allocation2 + $0x1a8] sm:$0xff]  ;;  %v332_v28 = vld [vmem:[#allocation2 + $0x1b0] sm:$0xff]  ;;  %v333_v29 = vld [vmem:[#allocation2 + $0x1b8] sm:$0xff] }
  0x26   :  { %2313 = vmatpush3.bf16.msra.mxu0 %v2312_v27  ;;  %v2378_v27 = vpack.c.bf16 %v331_v26, %v330_v25  ;;  %v2381_v30 = vpack.c.bf16 %v333_v29, %v332_v28  ;;  %v334_v31 = vld [vmem:[#allocation2 + $0x1c0] sm:$0xff]  ;;  %v335_v32 = vld [vmem:[#allocation2 + $0x1c8] sm:$0xff]  ;;  %v336_v34 = vld [vmem:[#allocation2 + $0x1d0] sm:$0xff] }
  0x27   :  { %2314 = vmatprep.subr.bf16.mxu0 %v2633_v0  ;;  %v337_v35 = vld [vmem:[#allocation2 + $0x1d8] sm:$0xff]  ;;  %v338_v37 = vld [vmem:[#allocation2 + $0x1e0] sm:$0xff]  ;;  %v339_v38 = vld [vmem:[#allocation2 + $0x1e8] sm:$0xff] }
  0x28   :  { %2337 = vmatpush3.bf16.msra.mxu1 %v2336_v36  ;;  %v2387_v36 = vpack.c.bf16 %v337_v35, %v336_v34  ;;  %v1632_v40 = vld [vmem:[%s2878_s2 + $0x1] ss:$0 sm:$0xff]  ;;  %v341_v48 = vld [vmem:[#allocation2 + $0x1f8] sm:$0xff]  ;;  %v644_v20 = vld [vmem:[#allocation2 + $0x208] sm:$0xff] }
  0x29   :  { %2338 = vmatprep.subr.bf16.mxu1 %v2633_v0  ;;  %v643_v19 = vld [vmem:[#allocation2 + $0x200] sm:$0xff]  ;;  %v645_v21 = vld [vmem:[#allocation2 + $0x210] sm:$0xff]  ;;  %v646_v23 = vld [vmem:[#allocation2 + $0x218] sm:$0xff] }
  0x2a   :  { %2316 = vmatpush3.bf16.msra.mxu0 %v2315_v33  ;;  %v2384_v33 = vpack.c.bf16 %v335_v32, %v334_v31  ;;  %v647_v25 = vld [vmem:[#allocation2 + $0x220] sm:$0xff]  ;;  %v648_v26 = vld [vmem:[#allocation2 + $0x228] sm:$0xff]  ;;  %v649_v28 = vld [vmem:[#allocation2 + $0x230] sm:$0xff] }
  0x2b   :  { %2317 = vmatprep.subr.bf16.mxu0 %v2633_v0  ;;  %v650_v29 = vld [vmem:[#allocation2 + $0x238] sm:$0xff]  ;;  %v651_v31 = vld [vmem:[#allocation2 + $0x240] sm:$0xff]  ;;  %v652_v32 = vld [vmem:[#allocation2 + $0x248] sm:$0xff] }
  0x2c   :  { %2340 = vmatpush3.bf16.msra.mxu1 %v2339_v42  ;;  %v653_v34 = vld [vmem:[#allocation2 + $0x250] sm:$0xff]  ;;  %v654_v35 = vld [vmem:[#allocation2 + $0x258] sm:$0xff] }
  0x2d   :  { %2341 = vmatprep.subr.bf16.mxu1 %v2633_v0 }
  0x2e   :  { %2319 = vmatpush3.bf16.msra.mxu0 %v2318_v39  ;;  %v2390_v39 = vpack.c.bf16 %v339_v38, %v338_v37  ;;  %v655_v37 = vld [vmem:[#allocation2 + $0x260] sm:$0xff]  ;;  %v656_v38 = vld [vmem:[#allocation2 + $0x268] sm:$0xff] }
  0x2f   :  { %2320 = vmatprep.subr.bf16.mxu0 %v2633_v0 }
  0x30   :  { %2343 = vmatpush3.bf16.msra.mxu1 %v2342_v46  ;;  %v340_v46 = vld [vmem:[#allocation2 + $0x1f0] sm:$0xff] }
  0x31   :  { %2344 = vmatprep.subr.bf16.mxu1 %v2633_v0  ;;  %v2393_v49 = vpack.c.bf16 %v341_v48, %v340_v46  ;;  %v657_v48 = vld [vmem:[#allocation2 + $0x270] sm:$0xff] }
  0x32   :  { %2322 = vmatpush3.bf16.msra.mxu0 %v2321_v45 }
  0x33   :  { %2347 = vmatprep.subr.bf16.mxu0 %v2633_v0 }
  0x34   :  { %2346 = vmatpush3.bf16.msra.mxu1 %v2345_v50  ;;  %v1634_v50 = vld [vmem:[%s2878_s2 + $0x2] ss:$0 sm:$0xff] }
  0x35   :  { %1902 = vmatmul.mubr.f32.vlgmr.msra.gmra.mrb[0].mxu0 %v2691_v47  ;;  %2371 = vmatprep.subr.bf16.mxu1 %v2633_v0 }
  0x36   :  { %1971 = vmatprep.mubr.msk.f32.mxu0 %vm2634_vm0, %v2635_v1  ;;  %2349 = vmatpush3.bf16.msra.mxu0 %v2348_v54 }
  0x37   :  { %2350 = vmatprep.subr.bf16.mxu0 %v2633_v0 }
  0x3a   :  { %2352 = vmatpush3.bf16.msra.mxu0 %v2351_v56  ;;  %v1636_v56 = vld [vmem:[%s2878_s2 + $0x3] ss:$0 sm:$0xff] }
  0x3b   :  { %2353 = vmatprep.subr.bf16.mxu0 %v2633_v0 }
  0x3e   :  { %2355 = vmatpush3.bf16.msra.mxu0 %v2354_v59 }
  0x3f   :  { %2356 = vmatprep.subr.bf16.mxu0 %v2633_v0 }
  0x42   :  { %2358 = vmatpush3.bf16.msra.mxu0 %v2357_v62  ;;  %v31_v62 = vlaneseq }
  0x43   :  { %2359 = vmatprep.subr.bf16.mxu0 %v2633_v0 }
  0x44   :  { %v2733_v63 = vand.u32 127, %v31_v62 }
  0x46   :  { %2361 = vmatpush3.bf16.msra.mxu0 %v2360_v3  ;;  %vm637_vm9 = vcmp.eq.s32.totalorder %v2733_v63, 17 }
  0x47   :  { %2362 = vmatprep.subr.bf16.mxu0 %v2633_v0 }
  0x4a   :  { %2364 = vmatpush3.bf16.msra.mxu0 %v2363_v6 }
  0x4b   :  { %2365 = vmatprep.subr.bf16.mxu0 %v2633_v0 }
  0x4e   :  { %2367 = vmatpush3.bf16.msra.mxu0 %v2366_v9  ;;  %v2736_v9 = vshrl.u32 %v31_v62, 7 }
  0x4f   :  { %2368 = vmatprep.subr.bf16.mxu0 %v2633_v0 }
  0x52   :  { %2370 = vmatpush3.bf16.msra.mxu0 %v2369_v18 }
  0x53   :  { %2009 = vmatprep.subr.mxu0 %v2635_v1 }
 0x108   :  { %v122_v11 = vpop.f32.mrb[0].mxu0 }
 0x109   :  { %v123_v12 = vadd.f32 %v1630_v10, %v122_v11  ;;  %v1903_v13 = vpop.f32.mrb[1].mxu0  ;;  %v470_v10 = vadd.s32 9, %v2736_v9  ;;  %v2636_v11 = vmov 1.0  }
 0x10b   :  { %v127_v14 = vmul.f32 0.22916667, %v123_v12  ;;  %vm126_vm1 = vcmp.ge.f32.partialorder %v123_v12, 0.0  ;;  %vm486_vm6 = vcmp.eq.s32.totalorder %v2733_v63, %v470_v10  ;;  %v754_v10 = vld [vmem:[#allocation2 + $0x2e8] sm:$0xff] }
 0x10d   :  { %v128_v15 = vsel %vm126_vm1, %v123_v12, %v127_v14 }
 0x10e   :  { %1937 = vmatmul.mubr.f32.vlgmr.msra.gmra.mrb[0].mxu1 %v128_v15 }
 0x10f   :  { %2006 = vmatprep.mubr.msk.f32.mxu1 %vm2634_vm0, %v2635_v1  ;;  %2373 = vmatpush3.bf16.msra.mxu1 %v2372_v22  ;;  %v2396_v22 = vpack.c.bf16 %v644_v20, %v643_v19  ;;  %v755_v20 = vld [vmem:[#allocation2 + $0x2f0] sm:$0xff] }
 0x110   :  { %2374 = vmatprep.subr.bf16.mxu1 %v2633_v0 }
 0x113   :  { %2376 = vmatpush3.bf16.msra.mxu1 %v2375_v24  ;;  %v2399_v24 = vpack.c.bf16 %v646_v23, %v645_v21  ;;  %v756_v21 = vld [vmem:[#allocation2 + $0x2f8] sm:$0xff]  ;;  %v839_v23 = vld [vmem:[#allocation2 + $0x300] sm:$0xff] }
 0x114   :  { %2377 = vmatprep.subr.bf16.mxu1 %v2633_v0 }
 0x117   :  { %2379 = vmatpush3.bf16.msra.mxu1 %v2378_v27  ;;  %v2402_v27 = vpack.c.bf16 %v648_v26, %v647_v25  ;;  %v841_v25 = vld [vmem:[#allocation2 + $0x310] sm:$0xff] }
 0x118   :  { %2380 = vmatprep.subr.bf16.mxu1 %v2633_v0 }
 0x11b   :  { %2382 = vmatpush3.bf16.msra.mxu1 %v2381_v30  ;;  %v2405_v30 = vpack.c.bf16 %v650_v29, %v649_v28  ;;  %v843_v28 = vld [vmem:[#allocation2 + $0x320] sm:$0xff]  ;;  %v844_v29 = vld [vmem:[#allocation2 + $0x328] sm:$0xff] }
 0x11c   :  { %2383 = vmatprep.subr.bf16.mxu1 %v2633_v0 }
 0x11f   :  { %2385 = vmatpush3.bf16.msra.mxu1 %v2384_v33  ;;  %v2408_v33 = vpack.c.bf16 %v652_v32, %v651_v31  ;;  %v845_v31 = vld [vmem:[#allocation2 + $0x330] sm:$0xff]  ;;  %v846_v32 = vld [vmem:[#allocation2 + $0x338] sm:$0xff] }
 0x120   :  { %2386 = vmatprep.subr.bf16.mxu1 %v2633_v0 }
 0x123   :  { %2388 = vmatpush3.bf16.msra.mxu1 %v2387_v36  ;;  %v2411_v36 = vpack.c.bf16 %v654_v35, %v653_v34  ;;  %v847_v34 = vld [vmem:[#allocation2 + $0x340] sm:$0xff]  ;;  %v848_v35 = vld [vmem:[#allocation2 + $0x348] sm:$0xff] }
 0x124   :  { %2389 = vmatprep.subr.bf16.mxu1 %v2633_v0 }
 0x127   :  { %2391 = vmatpush3.bf16.msra.mxu1 %v2390_v39  ;;  %v2414_v39 = vpack.c.bf16 %v656_v38, %v655_v37  ;;  %v849_v37 = vld [vmem:[#allocation2 + $0x350] sm:$0xff]  ;;  %v850_v38 = vld [vmem:[#allocation2 + $0x358] sm:$0xff] }
 0x128   :  { %2392 = vmatprep.subr.bf16.mxu1 %v2633_v0 }
 0x12b   :  { %2394 = vmatpush3.bf16.msra.mxu1 %v2393_v49  ;;  %v658_v49 = vld [vmem:[#allocation2 + $0x278] sm:$0xff] }
 0x12c   :  { %2395 = vmatprep.subr.bf16.mxu1 %v2633_v0 }
 0x1e1   :  { %v220_v41 = vpop.f32.mrb[0].mxu1 }
 0x1e2   :  { %v221_v42 = vadd.f32 %v1632_v40, %v220_v41  ;;  %v1938_v43 = vpop.f32.mrb[1].mxu1 }
 0x1e4   :  { %vm224_vm2 = vcmp.ge.f32.partialorder %v221_v42, 0.0  ;;  %v225_v44 = vmul.f32 0.22916667, %v221_v42 }
 0x1e6   :  { %v226_v45 = vsel %vm224_vm2, %v221_v42, %v225_v44 }
 0x1e7   :  { %1972 = vmatmul.mubr.f32.vlgmr.msra.gmra.mrb[2].mxu0 %v226_v45  ;;  %v2757_v45 = vld [vmem:[%s2876_s0 + $0x8] sm:$0xff] }
 0x1e8   :  { %2011 = vmatprep.mubr.msk.f32.mxu0 %vm2634_vm0, %v2635_v1  ;;  %2010 = vmatpush3.msk.msra.mxu0 %vm486_vm6, %v2636_v11 }
 0x1e9   :  { %2419 = vmatprep.subr.bf16.mxu0 %v2633_v0 }
 0x2ba   :  { %v318_v51 = vpop.f32.mrb[2].mxu0 }
 0x2bb   :  { %v319_v52 = vadd.f32 %v1634_v50, %v318_v51  ;;  %v1973_v53 = vpop.f32.mrb[3].mxu0  ;;  %v2417_v50 = vpack.c.bf16 %v658_v49, %v657_v48  ;;  %v741_v51 = vld [vmem:[#allocation2 + $0x280] sm:$0xff] }
 0x2bc   :  { %v743_v53 = vld [vmem:[#allocation2 + $0x290] sm:$0xff] }
 0x2bd   :  { %vm322_vm3 = vcmp.ge.f32.partialorder %v319_v52, 0.0  ;;  %v323_v54 = vmul.f32 0.22916667, %v319_v52 }
 0x2bf   :  { %v324_v55 = vsel %vm322_vm3, %v319_v52, %v323_v54  ;;  %v742_v52 = vld [vmem:[#allocation2 + $0x288] sm:$0xff]  ;;  %vm1216_vm3 = vcmp.eq.s32.totalorder %v2733_v63, 26 }
 0x2c0   :  { %2007 = vmatmul.mubr.f32.vlgmr.msra.gmra.mrb[2].mxu1 %v324_v55  ;;  %v2420_v54 = vpack.c.bf16 %v742_v52, %v741_v51  ;;  %v744_v55 = vld [vmem:[#allocation2 + $0x298] sm:$0xff]  ;;  %v853_v51 = vld [vmem:[#allocation2 + $0x370] sm:$0xff] }
 0x2c1   :  { %2046 = vmatprep.mubr.msk.f32.mxu1 %vm2634_vm0, %v2635_v1  ;;  %2397 = vmatpush3.bf16.msra.mxu1 %v2396_v22  ;;  %v2441_v22 = vpack.c.bf16 %v756_v21, %v755_v20  ;;  %v854_v52 = vld [vmem:[#allocation2 + $0x378] sm:$0xff] }
 0x2c2   :  { %2398 = vmatprep.subr.bf16.mxu1 %v2633_v0 }
 0x2c5   :  { %2400 = vmatpush3.bf16.msra.mxu1 %v2399_v24  ;;  %v840_v24 = vld [vmem:[#allocation2 + $0x308] sm:$0xff] }
 0x2c6   :  { %2401 = vmatprep.subr.bf16.mxu1 %v2633_v0  ;;  %v2444_v26 = vpack.c.bf16 %v840_v24, %v839_v23  ;;  %v951_v23 = vld [vmem:[#allocation2 + $0x3f0] sm:$0xff]  ;;  %v952_v24 = vld [vmem:[#allocation2 + $0x3f8] sm:$0xff] }
 0x2c9   :  { %2403 = vmatpush3.bf16.msra.mxu1 %v2402_v27  ;;  %v842_v27 = vld [vmem:[#allocation2 + $0x318] sm:$0xff] }
 0x2ca   :  { %2404 = vmatprep.subr.bf16.mxu1 %v2633_v0 }
 0x2cd   :  { %2406 = vmatpush3.bf16.msra.mxu1 %v2405_v30  ;;  %v2450_v30 = vpack.c.bf16 %v844_v29, %v843_v28 }
 0x2ce   :  { %2407 = vmatprep.subr.bf16.mxu1 %v2633_v0 }
 0x2d1   :  { %2409 = vmatpush3.bf16.msra.mxu1 %v2408_v33  ;;  %v2453_v33 = vpack.c.bf16 %v846_v32, %v845_v31  ;;  %v1647_v31 = vld [vmem:[%s2878_s2 + $0x7] ss:$0 sm:$0xff] }
 0x2d2   :  { %2410 = vmatprep.subr.bf16.mxu1 %v2633_v0 }
 0x2d5   :  { %2412 = vmatpush3.bf16.msra.mxu1 %v2411_v36  ;;  %v2456_v36 = vpack.c.bf16 %v848_v35, %v847_v34 }
 0x2d6   :  { %2413 = vmatprep.subr.bf16.mxu1 %v2633_v0 }
 0x2d9   :  { %2415 = vmatpush3.bf16.msra.mxu1 %v2414_v39  ;;  %v2459_v39 = vpack.c.bf16 %v850_v38, %v849_v37 }
 0x2da   :  { %2416 = vmatprep.subr.bf16.mxu1 %v2633_v0 }
 0x2dd   :  { %2418 = vmatpush3.bf16.msra.mxu1 %v2417_v50 }
 0x2de   :  { %2443 = vmatprep.subr.bf16.mxu1 %v2633_v0 }
 0x393   :  { %v416_v57 = vpop.f32.mrb[2].mxu1 }
 0x394   :  { %v417_v58 = vadd.f32 %v1636_v56, %v416_v57  ;;  %v2008_v59 = vpop.f32.mrb[3].mxu1  ;;  %v2423_v56 = vpack.c.bf16 %v744_v55, %v743_v53  ;;  %v745_v57 = vld [vmem:[#allocation2 + $0x2a0] sm:$0xff]  ;;  %v2465_v53 = vpack.c.bf16 %v854_v52, %v853_v51  ;;  %v938_v55 = vld [vmem:[#allocation2 + $0x388] sm:$0xff] }
 0x396   :  { %v421_v60 = vmul.f32 0.22916667, %v417_v58  ;;  %vm420_vm4 = vcmp.ge.f32.partialorder %v417_v58, 0.0 }
 0x398   :  { %v422_v61 = vsel %vm420_vm4, %v417_v58, %v421_v60  ;;  %v746_v58 = vld [vmem:[#allocation2 + $0x2a8] sm:$0xff]  ;;  %v747_v60 = vld [vmem:[#allocation2 + $0x2b0] sm:$0xff] }
 0x399   :  { %423 = vmax.xlane.f32.xlu0 %v422_v61  ;;  %v2426_v59 = vpack.c.bf16 %v746_v58, %v745_v57  ;;  %v940_v58 = vld [vmem:[#allocation2 + $0x398] sm:$0xff] }
 0x426   :  { %v424_v2 = vpop.xlane.xlu0 %423 }
 0x427   :  { %v425_v3 = vsub.f32 %v422_v61, %v424_v2  ;;  %vm433_vm5 = vcmp.eq.f32.partialorder %v422_v61, %v424_v2  ;;  %v748_v61 = vld [vmem:[#allocation2 + $0x2b8] sm:$0xff]  ;;  %v749_v2 = vld [vmem:[#allocation2 + $0x2c0] sm:$0xff] }
 0x428   :  { %v434_v4 = vsel %vm433_vm5, %v2733_v63, 128  ;;  %v2429_v62 = vpack.c.bf16 %v748_v61, %v747_v60  ;;  %v941_v60 = vld [vmem:[#allocation2 + $0x3a0] sm:$0xff]  ;;  %v942_v61 = vld [vmem:[#allocation2 + $0x3a8] sm:$0xff] }
 0x429   :  { %v426_v5 = vmul.f32 1.442695, %v425_v3  ;;  %v436_v6 = vshra.s32 %v434_v4, 16  ;;  %v435_v12 = vand.u32 65535, %v434_v4  ;;  %v750_v3 = vld [vmem:[#allocation2 + $0x2c8] sm:$0xff] }
 0x42a   :  { %v2432_v4 = vpack.c.bf16 %v750_v3, %v749_v2  ;;  %v943_v2 = vld [vmem:[#allocation2 + $0x3b0] sm:$0xff]  ;;  %v944_v3 = vld [vmem:[#allocation2 + $0x3b8] sm:$0xff] }
 0x42b   :  { %2594 = vpow2.f32 %v426_v5  ;;  %v438_v7 = vcvt.s32.f32 %v436_v6  ;;  %v437_v14 = vcvt.s32.f32 %v435_v12  ;;  %v751_v5 = vld [vmem:[#allocation2 + $0x2d0] sm:$0xff]  ;;  %v752_v6 = vld [vmem:[#allocation2 + $0x2d8] sm:$0xff] }
 0x42d   :  { %439 = vmin.xlane.f32.xlu1 %v438_v7 }
 0x435   :  { %v2595_v8 = vpop.eup %2594 }
 0x436   :  { %428 = vadd.xlane.f32.xlu0 %v2595_v8 }
 0x4ba   :  { %v440_v13 = vpop.xlane.xlu1 %439 }
 0x4bb   :  { %vm441_vm7 = vcmp.eq.f32.partialorder %v438_v7, %v440_v13  ;;  %v446_v40 = vcvt.f32.s32 %v440_v13  ;;  %v2435_v7 = vpack.c.bf16 %v752_v6, %v751_v5  ;;  %v945_v5 = vld [vmem:[#allocation2 + $0x3c0] sm:$0xff]  ;;  %v946_v6 = vld [vmem:[#allocation2 + $0x3c8] sm:$0xff] }
 0x4bc   :  { %v442_v15 = vsel %vm441_vm7, %v437_v14, inf }
 0x4bd   :  { %443 = vmin.xlane.f32.xlu1 %v442_v15  ;;  %v447_v42 = vshll.u32 %v446_v40, 16  ;;  %v1639_v15 = vsel %vm637_vm9, 1.0, %v2635_v1  ;;  %v851_v40 = vld [vmem:[#allocation2 + $0x360] sm:$0xff] }
 0x4c3   :  { %v429_v16 = vpop.xlane.xlu0 %428 }
 0x4c4   :  { %2596 = vrcp.f32 %v429_v16 }
 0x4ce   :  { %v2597_v17 = vpop.eup %2596 }
 0x4cf   :  { %v431_v18 = vmul.f32 %v2597_v17, %v2595_v8  ;;  %v753_v8 = vld [vmem:[#allocation2 + $0x2e0] sm:$0xff] }
 0x4d0   :  { %v2438_v12 = vpack.c.bf16 %v754_v10, %v753_v8  ;;  %v947_v8 = vld [vmem:[#allocation2 + $0x3d0] sm:$0xff]  ;;  %v948_v10 = vld [vmem:[#allocation2 + $0x3d8] sm:$0xff] }
 0x4d1   :  { %432 = vst [vmem:[%s2879_s3] sm:$0xff] %v431_v18  ;;  %2012 = vmatmul.mubr.f32.vlgmr.msra.gmra.mrb[4].mxu0 %v431_v18 }
 0x4d2   :  { %2081 = vmatprep.mubr.msk.f32.mxu0 %vm2634_vm0, %v2635_v1  ;;  %2421 = vmatpush3.bf16.msra.mxu0 %v2420_v54  ;;  %v937_v54 = vld [vmem:[#allocation2 + $0x380] sm:$0xff] }
 0x4d3   :  { %2422 = vmatprep.subr.bf16.mxu0 %v2633_v0  ;;  %v2468_v57 = vpack.c.bf16 %v938_v55, %v937_v54  ;;  %v1224_v54 = vld [vmem:[#allocation2 + $0x410] sm:$0xff] }
 0x4d6   :  { %2424 = vmatpush3.bf16.msra.mxu0 %v2423_v56  ;;  %v939_v56 = vld [vmem:[#allocation2 + $0x390] sm:$0xff] }
 0x4d7   :  { %2425 = vmatprep.subr.bf16.mxu0 %v2633_v0 }
 0x4da   :  { %2427 = vmatpush3.bf16.msra.mxu0 %v2426_v59  ;;  %v2471_v59 = vpack.c.bf16 %v940_v58, %v939_v56  ;;  %v1225_v56 = vld [vmem:[#allocation2 + $0x418] sm:$0xff]  ;;  %v1226_v58 = vld [vmem:[#allocation2 + $0x420] sm:$0xff] }
 0x4db   :  { %2428 = vmatprep.subr.bf16.mxu0 %v2633_v0 }
 0x4de   :  { %2430 = vmatpush3.bf16.msra.mxu0 %v2429_v62  ;;  %v2474_v62 = vpack.c.bf16 %v942_v61, %v941_v60  ;;  %v1228_v61 = vld [vmem:[#allocation2 + $0x430] sm:$0xff] }
 0x4df   :  { %2431 = vmatprep.subr.bf16.mxu0 %v2633_v0 }
 0x4e2   :  { %2433 = vmatpush3.bf16.msra.mxu0 %v2432_v4  ;;  %v2477_v4 = vpack.c.bf16 %v944_v3, %v943_v2  ;;  %v1230_v3 = vld [vmem:[#allocation2 + $0x440] sm:$0xff] }
 0x4e3   :  { %2434 = vmatprep.subr.bf16.mxu0 %v2633_v0 }
 0x4e6   :  { %2436 = vmatpush3.bf16.msra.mxu0 %v2435_v7  ;;  %v2480_v7 = vpack.c.bf16 %v946_v6, %v945_v5  ;;  %v1232_v6 = vld [vmem:[#allocation2 + $0x450] sm:$0xff] }
 0x4e7   :  { %2437 = vmatprep.subr.bf16.mxu0 %v2633_v0 }
 0x4ea   :  { %2439 = vmatpush3.bf16.msra.mxu0 %v2438_v12  ;;  %v2483_v12 = vpack.c.bf16 %v948_v10, %v947_v8  ;;  %v1234_v10 = vld [vmem:[#allocation2 + $0x460] sm:$0xff] }
 0x4eb   :  { %2440 = vmatprep.subr.bf16.mxu0 %v2633_v0 }
 0x4ee   :  { %2442 = vmatpush3.bf16.msra.mxu0 %v2441_v22 }
 0x4ef   :  { %2467 = vmatprep.subr.bf16.mxu0 %v2633_v0 }
 0x54a   :  { %v444_v41 = vpop.xlane.xlu1 %443 }
 0x54b   :  { %v445_v43 = vcvt.f32.s32 %v444_v41  ;;  %v852_v41 = vld [vmem:[#allocation2 + $0x368] sm:$0xff] }
 0x54d   :  { %v448_v44 = vadd.s32 %v447_v42, %v445_v43  ;;  %v2462_v42 = vpack.c.bf16 %v852_v41, %v851_v40  ;;  %v1641_v43 = vld [vmem:[%s2878_s2 + $0x4] ss:$0 sm:$0xff] }
 0x54f   :  { %vm449_vm8 = vcmp.eq.s32.totalorder %v2733_v63, %v448_v44 }
 0x550   :  { %v450_v46 = vsel %vm449_vm8, %v2757_v45, 0.0 }
 0x551   :  { %451 = vadd.xlane.f32.xlu0 %v450_v46 }
 0x5a4   :  { %v632_v13 = vpop.f32.mrb[4].mxu0 }
 0x5a5   :  { %v2013_v14 = vpop.f32.mrb[5].mxu0  ;;  %v636_v17 = vadd.f32 %v632_v13, %v2691_v47  ;;  %v2447_v47 = vpack.c.bf16 %v842_v27, %v841_v25  ;;  %v949_v13 = vld [vmem:[#allocation2 + $0x3e0] sm:$0xff]  ;;  %v2489_v25 = vpack.c.bf16 %v952_v24, %v951_v23 }
 0x5a6   :  { %v950_v14 = vld [vmem:[#allocation2 + $0x3e8] sm:$0xff]  ;;  %v1320_v24 = vld [vmem:[#allocation2 + $0x480] sm:$0xff] }
 0x5de   :  { %v452_v16 = vpop.xlane.xlu0 %451 }
 0x5df   :  { %v640_v18 = vmul.f32 %v1639_v15, %v452_v16  ;;  %v2486_v15 = vpack.c.bf16 %v950_v14, %v949_v13  ;;  %v1643_v16 = vld [vmem:[%s2878_s2 + $0x5] ss:$0 sm:$0xff] }
 0x5e1   :  { %v2772_v19 = vadd.f32 %v640_v18, %v636_v17 }
 0x5e3   :  { %2047 = vmatmul.mubr.f32.vlgmr.msra.gmra.mrb[4].mxu1 %v2772_v19 }
 0x5e4   :  { %2116 = vmatprep.mubr.msk.f32.mxu1 %vm2634_vm0, %v2635_v1  ;;  %2445 = vmatpush3.bf16.msra.mxu1 %v2444_v26  ;;  %v1645_v26 = vld [vmem:[%s2878_s2 + $0x6] ss:$0 sm:$0xff] }
 0x5e5   :  { %2446 = vmatprep.subr.bf16.mxu1 %v2633_v0 }
 0x5e8   :  { %2448 = vmatpush3.bf16.msra.mxu1 %v2447_v47 }
 0x5e9   :  { %2449 = vmatprep.subr.bf16.mxu1 %v2633_v0 }
 0x5ec   :  { %2451 = vmatpush3.bf16.msra.mxu1 %v2450_v30 }
 0x5ed   :  { %2452 = vmatprep.subr.bf16.mxu1 %v2633_v0 }
 0x5f0   :  { %2454 = vmatpush3.bf16.msra.mxu1 %v2453_v33 }
 0x5f1   :  { %2455 = vmatprep.subr.bf16.mxu1 %v2633_v0 }
 0x5f4   :  { %2457 = vmatpush3.bf16.msra.mxu1 %v2456_v36 }
 0x5f5   :  { %2458 = vmatprep.subr.bf16.mxu1 %v2633_v0 }
 0x5f8   :  { %2460 = vmatpush3.bf16.msra.mxu1 %v2459_v39 }
 0x5f9   :  { %2461 = vmatprep.subr.bf16.mxu1 %v2633_v0 }
 0x5fc   :  { %2463 = vmatpush3.bf16.msra.mxu1 %v2462_v42 }
 0x5fd   :  { %2464 = vmatprep.subr.bf16.mxu1 %v2633_v0 }
 0x600   :  { %2466 = vmatpush3.bf16.msra.mxu1 %v2465_v53 }
 0x601   :  { %2154 = vmatprep.subr.mxu1 %v2635_v1 }
 0x6b6   :  { %v733_v44 = vpop.f32.mrb[4].mxu1 }
 0x6b7   :  { %v734_v46 = vadd.f32 %v1641_v43, %v733_v44  ;;  %v2048_v48 = vpop.f32.mrb[5].mxu1  ;;  %v1065_v44 = vadd.s32 18, %v2736_v9  ;;  %v1222_v9 = vld [vmem:[#allocation2 + $0x400] sm:$0xff] }
 0x6b9   :  { %vm737_vm10 = vcmp.ge.f32.partialorder %v734_v46, 0.0  ;;  %v738_v49 = vmul.f32 0.22916667, %v734_v46  ;;  %vm1081_vm15 = vcmp.eq.s32.totalorder %v2733_v63, %v1065_v44 }
 0x6bb   :  { %v739_v50 = vsel %vm737_vm10, %v734_v46, %v738_v49 }
 0x6bc   :  { %2082 = vmatmul.mubr.f32.vlgmr.msra.gmra.mrb[6].mxu0 %v739_v50 }
 0x6bd   :  { %2151 = vmatprep.mubr.msk.f32.mxu0 %vm2634_vm0, %v2635_v1  ;;  %2469 = vmatpush3.bf16.msra.mxu0 %v2468_v57  ;;  %v2495_v57 = vpack.c.bf16 %v1225_v56, %v1224_v54  ;;  %v1419_v54 = vld [vmem:[#allocation2 + $0x508] sm:$0xff]  ;;  %v1421_v56 = vld [vmem:[#allocation2 + $0x518] sm:$0xff] }
 0x6be   :  { %2470 = vmatprep.subr.bf16.mxu0 %v2633_v0 }
 0x6c1   :  { %2472 = vmatpush3.bf16.msra.mxu0 %v2471_v59  ;;  %v1227_v59 = vld [vmem:[#allocation2 + $0x428] sm:$0xff] }
 0x6c2   :  { %2473 = vmatprep.subr.bf16.mxu0 %v2633_v0  ;;  %v2498_v60 = vpack.c.bf16 %v1227_v59, %v1226_v58  ;;  %v1423_v58 = vld [vmem:[#allocation2 + $0x528] sm:$0xff] }
 0x6c5   :  { %2475 = vmatpush3.bf16.msra.mxu0 %v2474_v62  ;;  %v1229_v62 = vld [vmem:[#allocation2 + $0x438] sm:$0xff] }
 0x6c6   :  { %2476 = vmatprep.subr.bf16.mxu0 %v2633_v0  ;;  %v2501_v2 = vpack.c.bf16 %v1229_v62, %v1228_v61  ;;  %v1425_v61 = vld [vmem:[#allocation2 + $0x538] sm:$0xff] }
 0x6c9   :  { %2478 = vmatpush3.bf16.msra.mxu0 %v2477_v4  ;;  %v1231_v4 = vld [vmem:[#allocation2 + $0x448] sm:$0xff] }
 0x6ca   :  { %2479 = vmatprep.subr.bf16.mxu0 %v2633_v0  ;;  %v2504_v5 = vpack.c.bf16 %v1231_v4, %v1230_v3  ;;  %v1427_v3 = vld [vmem:[#allocation2 + $0x548] sm:$0xff] }
 0x6cd   :  { %2481 = vmatpush3.bf16.msra.mxu0 %v2480_v7  ;;  %v1233_v7 = vld [vmem:[#allocation2 + $0x458] sm:$0xff] }
 0x6ce   :  { %2482 = vmatprep.subr.bf16.mxu0 %v2633_v0  ;;  %v2507_v8 = vpack.c.bf16 %v1233_v7, %v1232_v6  ;;  %v1429_v6 = vld [vmem:[#allocation2 + $0x558] sm:$0xff] }
 0x6d1   :  { %2484 = vmatpush3.bf16.msra.mxu0 %v2483_v12  ;;  %v1235_v12 = vld [vmem:[#allocation2 + $0x468] sm:$0xff] }
 0x6d2   :  { %2485 = vmatprep.subr.bf16.mxu0 %v2633_v0  ;;  %v2510_v13 = vpack.c.bf16 %v1235_v12, %v1234_v10  ;;  %v1431_v10 = vld [vmem:[#allocation2 + $0x568] sm:$0xff] }
 0x6d5   :  { %2487 = vmatpush3.bf16.msra.mxu0 %v2486_v15 }
 0x6d6   :  { %2488 = vmatprep.subr.bf16.mxu0 %v2633_v0 }
 0x6d9   :  { %2490 = vmatpush3.bf16.msra.mxu0 %v2489_v25  ;;  %v1321_v25 = vld [vmem:[#allocation2 + $0x488] sm:$0xff] }
 0x6da   :  { %2491 = vmatprep.subr.bf16.mxu0 %v2633_v0 }
 0x78f   :  { %v831_v17 = vpop.f32.mrb[6].mxu0 }
 0x790   :  { %v832_v18 = vadd.f32 %v1643_v16, %v831_v17  ;;  %v2083_v20 = vpop.f32.mrb[7].mxu0 }
 0x792   :  { %vm835_vm11 = vcmp.ge.f32.partialorder %v832_v18, 0.0  ;;  %v836_v21 = vmul.f32 0.22916667, %v832_v18 }
 0x794   :  { %v837_v22 = vsel %vm835_vm11, %v832_v18, %v836_v21  ;;  %v1236_v21 = vld [vmem:[#allocation2 + $0x470] sm:$0xff] }
 0x795   :  { %2117 = vmatmul.mubr.f32.vlgmr.msra.gmra.mrb[6].mxu1 %v837_v22  ;;  %v1237_v22 = vld [vmem:[#allocation2 + $0x478] sm:$0xff] }
 0x796   :  { %2156 = vmatprep.mubr.msk.f32.mxu1 %vm2634_vm0, %v2635_v1  ;;  %2155 = vmatpush3.msk.msra.mxu1 %vm1081_vm15, %v2636_v11  ;;  %v1223_v11 = vld [vmem:[#allocation2 + $0x408] sm:$0xff]  ;;  %v2513_v23 = vpack.c.bf16 %v1237_v22, %v1236_v21  ;;  %v1433_v21 = vld [vmem:[#allocation2 + $0x578] sm:$0xff] }
 0x797   :  { %2515 = vmatprep.subr.bf16.mxu1 %v2633_v0  ;;  %v2492_v55 = vpack.c.bf16 %v1223_v11, %v1222_v9  ;;  %v1418_v11 = vld [vmem:[#allocation2 + $0x500] sm:$0xff] }
 0x868   :  { %v929_v27 = vpop.f32.mrb[6].mxu1 }
 0x869   :  { %v930_v47 = vadd.f32 %v1645_v26, %v929_v27  ;;  %v2118_v28 = vpop.f32.mrb[7].mxu1  ;;  %v1322_v26 = vld [vmem:[#allocation2 + $0x490] sm:$0xff]  ;;  %v2516_v27 = vpack.c.bf16 %v1321_v25, %v1320_v24  ;;  %v1517_v24 = vld [vmem:[#allocation2 + $0x588] sm:$0xff] }
 0x86a   :  { %v1518_v25 = vld [vmem:[#allocation2 + $0x590] sm:$0xff] }
 0x86b   :  { %vm933_vm12 = vcmp.ge.f32.partialorder %v930_v47, 0.0  ;;  %v934_v29 = vmul.f32 0.22916667, %v930_v47 }
 0x86d   :  { %v935_v30 = vsel %vm933_vm12, %v930_v47, %v934_v29  ;;  %v1323_v47 = vld [vmem:[#allocation2 + $0x498] sm:$0xff]  ;;  %v1324_v29 = vld [vmem:[#allocation2 + $0x4a0] sm:$0xff] }
 0x86e   :  { %2152 = vmatmul.mubr.f32.vlgmr.msra.gmra.mrb[8].mxu0 %v935_v30  ;;  %v2519_v28 = vpack.c.bf16 %v1323_v47, %v1322_v26  ;;  %v1325_v30 = vld [vmem:[#allocation2 + $0x4a8] sm:$0xff] }
 0x86f   :  { %2191 = vmatprep.mubr.msk.f32.mxu0 %vm2634_vm0, %v2635_v1  ;;  %2493 = vmatpush3.bf16.msra.mxu0 %v2492_v55  ;;  %v2540_v55 = vpack.c.bf16 %v1419_v54, %v1418_v11 }
 0x870   :  { %2494 = vmatprep.subr.bf16.mxu0 %v2633_v0 }
 0x873   :  { %2496 = vmatpush3.bf16.msra.mxu0 %v2495_v57 }
 0x874   :  { %2497 = vmatprep.subr.bf16.mxu0 %v2633_v0 }
 0x877   :  { %2499 = vmatpush3.bf16.msra.mxu0 %v2498_v60  ;;  %v1424_v60 = vld [vmem:[#allocation2 + $0x530] sm:$0xff] }
 0x878   :  { %2500 = vmatprep.subr.bf16.mxu0 %v2633_v0  ;;  %v2549_v62 = vpack.c.bf16 %v1425_v61, %v1424_v60 }
 0x87b   :  { %2502 = vmatpush3.bf16.msra.mxu0 %v2501_v2  ;;  %v1426_v2 = vld [vmem:[#allocation2 + $0x540] sm:$0xff] }
 0x87c   :  { %2503 = vmatprep.subr.bf16.mxu0 %v2633_v0  ;;  %v2552_v4 = vpack.c.bf16 %v1427_v3, %v1426_v2 }
 0x87f   :  { %2505 = vmatpush3.bf16.msra.mxu0 %v2504_v5  ;;  %v1428_v5 = vld [vmem:[#allocation2 + $0x550] sm:$0xff] }
 0x880   :  { %2506 = vmatprep.subr.bf16.mxu0 %v2633_v0  ;;  %v2555_v7 = vpack.c.bf16 %v1429_v6, %v1428_v5 }
 0x883   :  { %2508 = vmatpush3.bf16.msra.mxu0 %v2507_v8  ;;  %v1430_v8 = vld [vmem:[#allocation2 + $0x560] sm:$0xff] }
 0x884   :  { %2509 = vmatprep.subr.bf16.mxu0 %v2633_v0  ;;  %v2558_v12 = vpack.c.bf16 %v1431_v10, %v1430_v8 }
 0x887   :  { %2511 = vmatpush3.bf16.msra.mxu0 %v2510_v13  ;;  %v1653_v13 = vld [vmem:[%s2878_s2 + $0x8] ss:$0 sm:$0xff] }
 0x888   :  { %2512 = vmatprep.subr.bf16.mxu0 %v2633_v0 }
 0x88b   :  { %2514 = vmatpush3.bf16.msra.mxu0 %v2513_v23  ;;  %v1516_v23 = vld [vmem:[#allocation2 + $0x580] sm:$0xff] }
 0x88c   :  { %2539 = vmatprep.subr.bf16.mxu0 %v2633_v0  ;;  %v2564_v26 = vpack.c.bf16 %v1517_v24, %v1516_v23 }
 0x941   :  { %v1027_v32 = vpop.f32.mrb[8].mxu0 }
 0x942   :  { %v1028_v33 = vadd.f32 %v1647_v31, %v1027_v32  ;;  %v2153_v34 = vpop.f32.mrb[9].mxu0  ;;  %v1326_v31 = vld [vmem:[#allocation2 + $0x4b0] sm:$0xff]  ;;  %v1327_v32 = vld [vmem:[#allocation2 + $0x4b8] sm:$0xff] }
 0x943   :  { %v1328_v34 = vld [vmem:[#allocation2 + $0x4c0] sm:$0xff] }
 0x944   :  { %v1032_v35 = vmul.f32 0.22916667, %v1028_v33  ;;  %vm1031_vm13 = vcmp.ge.f32.partialorder %v1028_v33, 0.0 }
 0x946   :  { %v1033_v36 = vsel %vm1031_vm13, %v1028_v33, %v1032_v35  ;;  %v2525_v33 = vpack.c.bf16 %v1327_v32, %v1326_v31  ;;  %v1329_v35 = vld [vmem:[#allocation2 + $0x4c8] sm:$0xff]  ;;  %v1524_v32 = vld [vmem:[#allocation2 + $0x5c0] sm:$0xff] }
 0x947   :  { %1034 = vmax.xlane.f32.xlu1 %v1033_v36 }
 0x9d4   :  { %v1035_v37 = vpop.xlane.xlu1 %1034 }
 0x9d5   :  { %v1036_v38 = vsub.f32 %v1033_v36, %v1035_v37  ;;  %vm1045_vm14 = vcmp.eq.f32.partialorder %v1033_v36, %v1035_v37  ;;  %v2528_v36 = vpack.c.bf16 %v1329_v35, %v1328_v34  ;;  %v1330_v37 = vld [vmem:[#allocation2 + $0x4d0] sm:$0xff] }
 0x9d6   :  { %v1046_v39 = vsel %vm1045_vm14, %v2733_v63, 128  ;;  %v1526_v35 = vld [vmem:[#allocation2 + $0x5d0] sm:$0xff] }
 0x9d7   :  { %v1037_v40 = vmul.f32 1.442695, %v1036_v38  ;;  %v1048_v41 = vshra.s32 %v1046_v39, 16  ;;  %v1047_v46 = vand.u32 65535, %v1046_v39  ;;  %v1331_v38 = vld [vmem:[#allocation2 + $0x4d8] sm:$0xff] }
 0x9d8   :  { %v2531_v39 = vpack.c.bf16 %v1331_v38, %v1330_v37  ;;  %v1528_v38 = vld [vmem:[#allocation2 + $0x5e0] sm:$0xff] }
 0x9d9   :  { %2598 = vpow2.f32 %v1037_v40  ;;  %v1050_v42 = vcvt.s32.f32 %v1048_v41  ;;  %v1049_v49 = vcvt.s32.f32 %v1047_v46  ;;  %v1332_v40 = vld [vmem:[#allocation2 + $0x4e0] sm:$0xff]  ;;  %v1333_v41 = vld [vmem:[#allocation2 + $0x4e8] sm:$0xff]  ;;  %v1651_v46 = vsel %vm1216_vm3, 1.0, %v2635_v1 }
 0x9db   :  { %1051 = vmin.xlane.f32.xlu1 %v1050_v42 }
 0x9e3   :  { %v2599_v43 = vpop.eup %2598 }
 0x9e4   :  { %1039 = vadd.xlane.f32.xlu0 %v2599_v43 }
 0xa68   :  { %v1052_v48 = vpop.xlane.xlu1 %1051 }
 0xa69   :  { %vm1053_vm1 = vcmp.eq.f32.partialorder %v1050_v42, %v1052_v48  ;;  %v1058_v14 = vcvt.f32.s32 %v1052_v48  ;;  %v2534_v42 = vpack.c.bf16 %v1333_v41, %v1332_v40  ;;  %v1655_v41 = vld [vmem:[%s2878_s2 + $0x9] ss:$0 sm:$0xff] }
 0xa6a   :  { %v1054_v50 = vsel %vm1053_vm1, %v1049_v49, inf }
 0xa6b   :  { %1055 = vmin.xlane.f32.xlu0 %v1054_v50  ;;  %v1059_v16 = vshll.u32 %v1058_v14, 16 }
 0xa71   :  { %v1040_v51 = vpop.xlane.xlu0 %1039 }
 0xa72   :  { %2600 = vrcp.f32 %v1040_v51 }
 0xa7c   :  { %v2601_v52 = vpop.eup %2600 }
 0xa7d   :  { %v1042_v53 = vmul.f32 %v2601_v52, %v2599_v43  ;;  %v1334_v52 = vld [vmem:[#allocation2 + $0x4f0] sm:$0xff] }
 0xa7f   :  { %1648 = vst [vmem:[%s2879_s3 + $0x8] sm:$0xff] %v1042_v53  ;;  %2157 = vmatmul.mubr.f32.vlgmr.msra.gmra.mrb[8].mxu1 %v1042_v53  ;;  %v1335_v53 = vld [vmem:[#allocation2 + $0x4f8] sm:$0xff] }
 0xa80   :  { %2226 = vmatprep.mubr.msk.f32.mxu1 %vm2634_vm0, %v2635_v1  ;;  %2517 = vmatpush3.bf16.msra.mxu1 %v2516_v27  ;;  %v2537_v9 = vpack.c.bf16 %v1335_v53, %v1334_v52  ;;  %v1519_v27 = vld [vmem:[#allocation2 + $0x598] sm:$0xff]  ;;  %v1657_v52 = vld [vmem:[%s2878_s2 + $0xa] ss:$0 sm:$0xff] }
 0xa81   :  { %2518 = vmatprep.subr.bf16.mxu1 %v2633_v0  ;;  %v2567_v47 = vpack.c.bf16 %v1519_v27, %v1518_v25 }
 0xa84   :  { %2520 = vmatpush3.bf16.msra.mxu1 %v2519_v28  ;;  %v1520_v28 = vld [vmem:[#allocation2 + $0x5a0] sm:$0xff] }
 0xa85   :  { %2521 = vmatprep.subr.bf16.mxu1 %v2633_v0 }
 0xaf8   :  { %v1056_v15 = vpop.xlane.xlu0 %1055 }
 0xaf9   :  { %v1057_v17 = vcvt.f32.s32 %v1056_v15 }
 0xafb   :  { %v1060_v18 = vadd.s32 %v1059_v16, %v1057_v17 }
 0xafd   :  { %vm1061_vm2 = vcmp.eq.s32.totalorder %v2733_v63, %v1060_v18  ;;  %v1420_v63 = vld [vmem:[#allocation2 + $0x510] sm:$0xff] }
 0xafe   :  { %v1062_v20 = vsel %vm1061_vm2, %v2757_v45, 0.0  ;;  %v2522_v45 = vpack.c.bf16 %v1325_v30, %v1324_v29  ;;  %v2543_v57 = vpack.c.bf16 %v1421_v56, %v1420_v63  ;;  %v1521_v29 = vld [vmem:[#allocation2 + $0x5a8] sm:$0xff] }
 0xaff   :  { %1063 = vadd.xlane.f32.xlu1 %v1062_v20  ;;  %v1432_v20 = vld [vmem:[#allocation2 + $0x570] sm:$0xff]  ;;  %v2570_v30 = vpack.c.bf16 %v1521_v29, %v1520_v28  ;;  %v1659_v63 = vld [vmem:[%s2878_s2 + $0xb] ss:$0 sm:$0xff] }
 0xb00   :  { %2523 = vmatpush3.bf16.msra.mxu1 %v2522_v45  ;;  %v2561_v22 = vpack.c.bf16 %v1433_v21, %v1432_v20  ;;  %v1523_v45 = vld [vmem:[#allocation2 + $0x5b8] sm:$0xff] }
 0xb01   :  { %2524 = vmatprep.subr.bf16.mxu1 %v2633_v0 }
 0xb04   :  { %2526 = vmatpush3.bf16.msra.mxu1 %v2525_v33  ;;  %v1525_v33 = vld [vmem:[#allocation2 + $0x5c8] sm:$0xff] }
 0xb05   :  { %2527 = vmatprep.subr.bf16.mxu1 %v2633_v0  ;;  %v2576_v34 = vpack.c.bf16 %v1525_v33, %v1524_v32 }
 0xb08   :  { %2529 = vmatpush3.bf16.msra.mxu1 %v2528_v36  ;;  %v1527_v36 = vld [vmem:[#allocation2 + $0x5d8] sm:$0xff] }
 0xb09   :  { %2530 = vmatprep.subr.bf16.mxu1 %v2633_v0  ;;  %v2579_v37 = vpack.c.bf16 %v1527_v36, %v1526_v35 }
 0xb0c   :  { %2532 = vmatpush3.bf16.msra.mxu1 %v2531_v39  ;;  %v1529_v39 = vld [vmem:[#allocation2 + $0x5e8] sm:$0xff] }
 0xb0d   :  { %2533 = vmatprep.subr.bf16.mxu1 %v2633_v0  ;;  %v2582_v40 = vpack.c.bf16 %v1529_v39, %v1528_v38 }
 0xb10   :  { %2535 = vmatpush3.bf16.msra.mxu1 %v2534_v42 }
 0xb11   :  { %2536 = vmatprep.subr.bf16.mxu1 %v2633_v0 }
 0xb14   :  { %2538 = vmatpush3.bf16.msra.mxu1 %v2537_v9 }
 0xb15   :  { %2563 = vmatprep.subr.bf16.mxu1 %v2633_v0 }
 0xb52   :  { %v1211_v43 = vpop.f32.mrb[8].mxu1 }
 0xb53   :  { %v2158_v44 = vpop.f32.mrb[9].mxu1  ;;  %v1215_v49 = vadd.f32 %v1211_v43, %v2772_v19  ;;  %v1422_v19 = vld [vmem:[#allocation2 + $0x520] sm:$0xff] }
 0xb54   :  { %v2546_v59 = vpack.c.bf16 %v1423_v58, %v1422_v19 }
 0xb8c   :  { %v1064_v48 = vpop.xlane.xlu1 %1063 }
 0xb8d   :  { %v1219_v50 = vmul.f32 %v1651_v46, %v1064_v48 }
 0xb8f   :  { %v1220_v51 = vadd.f32 %v1219_v50, %v1215_v49  ;;  %v1530_v49 = vld [vmem:[#allocation2 + $0x5f0] sm:$0xff]  ;;  %v1531_v50 = vld [vmem:[#allocation2 + $0x5f8] sm:$0xff] }
 0xb91   :  { %2192 = vmatmul.mubr.f32.vlgmr.msra.gmra.mrb[10].mxu0 %v1220_v51  ;;  %v2585_v51 = vpack.c.bf16 %v1531_v50, %v1530_v49 }
 0xb92   :  { %2261 = vmatprep.mubr.msk.f32.mxu0 %vm2634_vm0, %v2635_v1  ;;  %2541 = vmatpush3.bf16.msra.mxu0 %v2540_v55 }
 0xb93   :  { %2542 = vmatprep.subr.bf16.mxu0 %v2633_v0 }
 0xb96   :  { %2544 = vmatpush3.bf16.msra.mxu0 %v2543_v57 }
 0xb97   :  { %2545 = vmatprep.subr.bf16.mxu0 %v2633_v0 }
 0xb9a   :  { %2547 = vmatpush3.bf16.msra.mxu0 %v2546_v59 }
 0xb9b   :  { %2548 = vmatprep.subr.bf16.mxu0 %v2633_v0 }
 0xb9e   :  { %2550 = vmatpush3.bf16.msra.mxu0 %v2549_v62 }
 0xb9f   :  { %2551 = vmatprep.subr.bf16.mxu0 %v2633_v0 }
 0xba2   :  { %2553 = vmatpush3.bf16.msra.mxu0 %v2552_v4 }
 0xba3   :  { %2554 = vmatprep.subr.bf16.mxu0 %v2633_v0 }
 0xba6   :  { %2556 = vmatpush3.bf16.msra.mxu0 %v2555_v7 }
 0xba7   :  { %2557 = vmatprep.subr.bf16.mxu0 %v2633_v0 }
 0xbaa   :  { %2559 = vmatpush3.bf16.msra.mxu0 %v2558_v12 }
 0xbab   :  { %2560 = vmatprep.subr.bf16.mxu0 %v2633_v0 }
 0xbae   :  { %2562 = vmatpush3.bf16.msra.mxu0 %v2561_v22 }
 0xc64   :  { %v1312_v14 = vpop.f32.mrb[10].mxu0 }
 0xc65   :  { %v1313_v15 = vadd.f32 %v1653_v13, %v1312_v14  ;;  %v2193_v16 = vpop.f32.mrb[11].mxu0 }
 0xc67   :  { %vm1316_vm4 = vcmp.ge.f32.partialorder %v1313_v15, 0.0  ;;  %v1317_v17 = vmul.f32 0.22916667, %v1313_v15 }
 0xc69   :  { %v1318_v18 = vsel %vm1316_vm4, %v1313_v15, %v1317_v17 }
 0xc6a   :  { %2227 = vmatmul.mubr.f32.vlgmr.msra.gmra.mrb[10].mxu1 %v1318_v18 }
 0xc6b   :  { %2296 = vmatprep.mubr.msk.f32.mxu1 %vm2634_vm0, %v2635_v1  ;;  %2565 = vmatpush3.bf16.msra.mxu1 %v2564_v26  ;;  %v1522_v1 = vld [vmem:[#allocation2 + $0x5b0] sm:$0xff] }
 0xc6c   :  { %2566 = vmatprep.subr.bf16.mxu1 %v2633_v0  ;;  %v2573_v31 = vpack.c.bf16 %v1523_v45, %v1522_v1 }
 0xc6f   :  { %2568 = vmatpush3.bf16.msra.mxu1 %v2567_v47 }
 0xc70   :  { %2569 = vmatprep.subr.bf16.mxu1 %v2633_v0 }
 0xc73   :  { %2571 = vmatpush3.bf16.msra.mxu1 %v2570_v30 }
 0xc74   :  { %2572 = vmatprep.subr.bf16.mxu1 %v2633_v0 }
 0xc77   :  { %2574 = vmatpush3.bf16.msra.mxu1 %v2573_v31 }
 0xc78   :  { %2575 = vmatprep.subr.bf16.mxu1 %v2633_v0 }
 0xc7b   :  { %2577 = vmatpush3.bf16.msra.mxu1 %v2576_v34 }
 0xc7c   :  { %2578 = vmatprep.subr.bf16.mxu1 %v2633_v0 }
 0xc7f   :  { %2580 = vmatpush3.bf16.msra.mxu1 %v2579_v37 }
 0xc80   :  { %2581 = vmatprep.subr.bf16.mxu1 %v2633_v0 }
 0xc83   :  { %2583 = vmatpush3.bf16.msra.mxu1 %v2582_v40 }
 0xc84   :  { %2584 = vmatprep.subr.bf16.mxu1 %v2633_v0 }
 0xc87   :  { %2586 = vmatpush3.bf16.msra.mxu1 %v2585_v51 }
 0xd3d   :  { %v1410_v42 = vpop.f32.mrb[10].mxu1 }
 0xd3e   :  { %v1411_v43 = vadd.f32 %v1655_v41, %v1410_v42  ;;  %v2228_v44 = vpop.f32.mrb[11].mxu1 }
 0xd40   :  { %vm1414_vm0 = vcmp.ge.f32.partialorder %v1411_v43, 0.0  ;;  %v1415_v46 = vmul.f32 0.22916667, %v1411_v43 }
 0xd42   :  { %v1416_v48 = vsel %vm1414_vm0, %v1411_v43, %v1415_v46 }
 0xd43   :  { %2262 = vmatmul.mubr.f32.vlgmr.msra.gmra.mrb[12].mxu0 %v1416_v48 }
 0xe16   :  { %v1508_v0 = vpop.f32.mrb[12].mxu0 }
 0xe17   :  { %v1509_v53 = vadd.f32 %v1657_v52, %v1508_v0  ;;  %v2263_v9 = vpop.f32.mrb[13].mxu0 }
 0xe19   :  { %vm1512_vm5 = vcmp.ge.f32.partialorder %v1509_v53, 0.0  ;;  %v1513_v11 = vmul.f32 0.22916667, %v1509_v53 }
 0xe1b   :  { %v1514_v54 = vsel %vm1512_vm5, %v1509_v53, %v1513_v11 }
 0xe1c   :  { %2297 = vmatmul.mubr.f32.vlgmr.msra.gmra.mrb[12].mxu1 %v1514_v54 }
 0xeef   :  { %v1606_v55 = vpop.f32.mrb[12].mxu1 }
 0xef0   :  { %v1607_v56 = vadd.f32 %v1659_v63, %v1606_v55  ;;  %v2298_v57 = vpop.f32.mrb[13].mxu1 }
 0xef2   :  { %vm1610_vm6 = vcmp.ge.f32.partialorder %v1607_v56, 0.0  ;;  %v1611_v19 = vmul.f32 0.22916667, %v1607_v56 }
 0xef4   :  { %v1612_v58 = vsel %vm1610_vm6, %v1607_v56, %v1611_v19 }
 0xef5   :  { %1613 = vmax.xlane.f32.xlu0 %v1612_v58 }
 0xf82   :  { %v1614_v59 = vpop.xlane.xlu0 %1613 }
 0xf83   :  { %v1615_v60 = vsub.f32 %v1612_v58, %v1614_v59 }
 0xf85   :  { %v1616_v61 = vmul.f32 1.442695, %v1615_v60 }
 0xf87   :  { %2602 = vpow2.f32 %v1616_v61 }
 0xf91   :  { %v2603_v62 = vpop.eup %2602 }
 0xf92   :  { %1618 = vadd.xlane.f32.xlu1 %v2603_v62 }
0x101f   :  { %v1619_v2 = vpop.xlane.xlu1 %1618 }
0x1020   :  { %2604 = vrcp.f32 %v1619_v2 }
0x102a   :  { %v2605_v3 = vpop.eup %2604 }
0x102b   :  { %v1621_v4 = vmul.f32 %v2605_v3, %v2603_v62 }
0x102d   :  { %1660 = vst [vmem:[%s2879_s3 + $0x10] sm:$0xff] %v1621_v4 }
0x102e   :  { %1628 = vsyncpa [#allocation3], 1 }

</bundles_post_ra>
